<compile_context>
chip_gen: v6e
topology: v6e:2x2x1
jax: 0.10.0
libtpu: 0.0.40
codegen_flags: <defaults>
</compile_context>

<pallas_src>
import functools

import jax
import jax.numpy as jnp
from jax.experimental import pallas as pl
from jax.experimental.pallas import tpu as pltpu

# MXU operand dtype; accumulation is always f32 (preferred_element_type).
MXU_DTYPE = jnp.bfloat16
LN_EPS = 1e-12

# dot_general dimension numbers (same naming as the official TPU flash kernels)
NN = (((1,), (0,)), ((), ()))   # standard:      A       @ B
NT = (((1,), (1,)), ((), ()))   # rhs-transposed: A      @ B^T
TN = (((0,), (0,)), ((), ()))   # lhs-transposed: A^T    @ B


# ----------------------------- in-kernel helpers -----------------------------

def _ln(x, g, b, eps):
    """LayerNorm over the last axis (f32 math); g/b are (1, H) and broadcast."""
    mu = jnp.mean(x, axis=-1, keepdims=True)
    var = jnp.mean(jnp.square(x - mu), axis=-1, keepdims=True)
    return (x - mu) * jax.lax.rsqrt(var + eps) * g + b


# ----------------------------- the encoder kernel -----------------------------

def _encoder_kernel(base_ref, mask_ref, visf_ref, visp_ref,
                    vw1_ref, vb1_ref, vw2_ref, vb2_ref, pw_ref, pb_ref,
                    eg_ref, eb_ref,
                    wqkv_ref, bqkv_ref, wo_ref, bo_ref, g1_ref, b1_ref,
                    wi_ref, bi_ref, wf_ref, bf_ref, g2_ref, b2_ref,
                    vqa2_ref, x_scr,
                    *, n_heads, len_vis_input, eps):
    """Grid = (batch, layer).  One fused transformer layer per step; layer axis is
    sequential ("arbitrary") and carries the per-batch residual in VMEM scratch.
    Step 0 also runs vis_embed / vis_pe_embed, the visual splice and the
    embedding LayerNorm; the last step emits vqa2_embed directly."""
    S, H = x_scr.shape
    dh = H // n_heads
    L = len_vis_input
    cdt = wqkv_ref.dtype                       # bf16 MXU operand dtype
    lyr = pl.program_id(1)                     # layer axis (innermost, sequential)

    # ---- layer 0 only: vis_embed / vis_pe_embed + visual splice + embedding LN ----
    @pl.when(lyr == 0)
    def _():
        vhid = jnp.dot(visf_ref[0].astype(cdt), vw1_ref[...],
                       preferred_element_type=jnp.float32) + vb1_ref[...]
        vf = jnp.dot(jnp.maximum(vhid, 0.0).astype(cdt), vw2_ref[...],
                     preferred_element_type=jnp.float32) + vb2_ref[...]      # (L, H)
        vp = jnp.maximum(
            jnp.dot(visp_ref[0].astype(cdt), pw_ref[...],
                    preferred_element_type=jnp.float32) + pb_ref[...], 0.0)  # (L, H)
        x0 = base_ref[0]                       # (S, H): we+pe+tte, visual rows = tte
        x_scr[...] = x0
        # splice the projected visual features / positions into rows 1..L
        x_scr[1:1 + L, :] = x0[1:1 + L, :] + vf + vp
        x_scr[...] = _ln(x_scr[...], eg_ref[...], eb_ref[...], eps)

    x = x_scr[...]                             # (S, H) f32 residual stream

    # ---- fused, TRANSPOSED QKV projection: qkv^T = Wqkv^T x^T -> (3H, S) ----
    # Rows are [q_h0 .. q_h{nh-1} | k_h0 .. | v_h{nh-1}]; 1/sqrt(dh) is pre-folded
    # into the Q rows at param-prep time, so per-head slices below are 8-aligned
    # sublane slices (free) instead of lane slices.
    qkv_t = jax.lax.dot_general(wqkv_ref[0], x.astype(cdt), NT,
                                preferred_element_type=jnp.float32) + bqkv_ref[0]
    qkv_c = qkv_t.astype(cdt)

    # hoisted out of the head loop (JAX does not CSE broadcast_in_dim / ref reads)
    mask_b = jnp.broadcast_to(mask_ref[0], (S, S))   # additive mask, (S, S)
    wo_l = wo_ref[0]                                 # (H, H)

    # ---- multi-head attention: sublane slices only, per-head accumulation ----
    att = jnp.zeros((S, H), jnp.float32)
    for h in range(n_heads):
        qh = qkv_c[h * dh:(h + 1) * dh, :]                       # (dh, S)
        kh = qkv_c[H + h * dh:H + (h + 1) * dh, :]               # (dh, S)
        vh = qkv_c[2 * H + h * dh:2 * H + (h + 1) * dh, :]       # (dh, S)
        s = jax.lax.dot_general(qh, kh, TN,
                                preferred_element_type=jnp.float32)   # (S, S)
        s = s + mask_b
        s = s - jnp.max(s, axis=-1, keepdims=True)
        p = jnp.exp(s)
        p = p * pl.reciprocal(jnp.sum(p, axis=-1, keepdims=True), approx=True)
        ctx = jax.lax.dot_general(p.astype(cdt), vh, NT,
                                  preferred_element_type=jnp.float32)  # (S, dh)
        # output projection accumulated per head (no head concat): wo sublane
        # slices at 8-row offsets are tile-aligned and free.
        att = att + jnp.dot(ctx.astype(cdt), wo_l[h * dh:(h + 1) * dh, :],
                            preferred_element_type=jnp.float32)
    att = att + bo_ref[0]
    h1 = _ln(att + x, g1_ref[0], b1_ref[0], eps)

    # ---- FFN + residual + LayerNorm2 (fused epilogue) ----
    ff = jnp.dot(h1.astype(cdt), wi_ref[0],
                 preferred_element_type=jnp.float32) + bi_ref[0]
    # TODO(synk): real BERT uses the exact erf GELU; tanh approximation kept for
    # portable Mosaic lowering (matches the in-script reference, |diff| < 1e-3).
    ff = jax.nn.gelu(ff, approximate=True)
    ff = jnp.dot(ff.astype(cdt), wf_ref[0],
                 preferred_element_type=jnp.float32) + bf_ref[0]
    h2 = _ln(ff + h1, g2_ref[0], b2_ref[0], eps)

    x_scr[...] = h2                            # residual stream stays in VMEM

    @pl.when(lyr == pl.num_programs(1) - 1)
    def _():
        # vqa2_embed = seq_out[0] * seq_out[len_vis_input + 1]  (static row slices)
        vqa2_ref[0] = h2[0:1, :] * h2[L + 1:L + 2, :]


# ----------------------------- Parameter init / prep -----------------------------

def init_params(key, *, vocab=100, hidden=32, n_layers=2, intermediate=64,
                vis_dim=64, pe_dim=16, max_pos=64, type_vocab=2):
    """Canonical (f32, reference-layout) parameters."""
    ks = iter(jax.random.split(key, 64))
    std = 0.02

    def nrm(shape):
        return std * jax.random.normal(next(ks), shape, jnp.float32)

    params = {
        # vis_embed: Linear(vis_dim, 2*hidden) -> ReLU -> Linear(2*hidden, hidden)
        "vis_embed": {
            "w1": nrm((vis_dim, 2 * hidden)), "b1": jnp.zeros((1, 2 * hidden)),
            "w2": nrm((2 * hidden, hidden)),  "b2": jnp.zeros((1, hidden)),
        },
        # vis_pe_embed: Linear(pe_dim, hidden) -> ReLU
        "vis_pe_embed": {"w": nrm((pe_dim, hidden)), "b": jnp.zeros((1, hidden))},
        "word_emb": nrm((vocab, hidden)),
        "pos_emb": nrm((max_pos, hidden)),
        "type_emb": nrm((type_vocab, hidden)),
        "emb_ln_g": jnp.ones((1, hidden)), "emb_ln_b": jnp.zeros((1, hidden)),
        # Per-layer weights stacked on a leading layer axis; Q/K/V fused into one
        # (H, 3H) matrix per layer.
        "wqkv": nrm((n_layers, hidden, 3 * hidden)),
        "bqkv": jnp.zeros((n_layers, 1, 3 * hidden)),
        "wo": nrm((n_layers, hidden, hidden)), "bo": jnp.zeros((n_layers, 1, hidden)),
        "ln1_g": jnp.ones((n_layers, 1, hidden)), "ln1_b": jnp.zeros((n_layers, 1, hidden)),
        "wi": nrm((n_layers, hidden, intermediate)), "bi": jnp.zeros((n_layers, 1, intermediate)),
        "wf": nrm((n_layers, intermediate, hidden)), "bf": jnp.zeros((n_layers, 1, hidden)),
        "ln2_g": jnp.ones((n_layers, 1, hidden)), "ln2_b": jnp.zeros((n_layers, 1, hidden)),
        # NOTE: the BERT pooler output is discarded by HateStem, so its weights
        # are intentionally omitted (dead compute).
    }
    return params


def prepare_kernel_params(params, *, n_heads):
    """One-time, out-of-jit weight prep: transpose + scale-fold the QKV projection,
    pre-cast every MXU operand to bf16.  Biases / LN params stay f32."""
    H = params["word_emb"].shape[1]
    dh = H // n_heads
    scale = 1.0 / (dh ** 0.5)
    # fold the 1/sqrt(dh) attention scale into the Q rows of the transposed weight
    qscale = jnp.concatenate([jnp.full((H,), scale, jnp.float32),
                              jnp.ones((2 * H,), jnp.float32)])
    wqkv_t = jnp.swapaxes(params["wqkv"], 1, 2) * qscale[None, :, None]   # (NL, 3H, H)
    bqkv_t = jnp.swapaxes(params["bqkv"], 1, 2) * qscale[None, :, None]   # (NL, 3H, 1)

    ve, vpe = params["vis_embed"], params["vis_pe_embed"]
    kp = dict(
        word_emb=params["word_emb"], pos_emb=params["pos_emb"],
        type_emb=params["type_emb"],
        emb_ln_g=params["emb_ln_g"], emb_ln_b=params["emb_ln_b"],
        ve_w1=ve["w1"].astype(MXU_DTYPE), ve_b1=ve["b1"],
        ve_w2=ve["w2"].astype(MXU_DTYPE), ve_b2=ve["b2"],
        vpe_w=vpe["w"].astype(MXU_DTYPE), vpe_b=vpe["b"],
        wqkv_t=wqkv_t.astype(MXU_DTYPE), bqkv_t=bqkv_t.astype(jnp.float32),
        wo=params["wo"].astype(MXU_DTYPE), bo=params["bo"],
        ln1_g=params["ln1_g"], ln1_b=params["ln1_b"],
        wi=params["wi"].astype(MXU_DTYPE), bi=params["bi"],
        wf=params["wf"].astype(MXU_DTYPE), bf=params["bf"],
        ln2_g=params["ln2_g"], ln2_b=params["ln2_b"],
    )
    return jax.tree_util.tree_map(jnp.asarray, kp)


# ----------------------------- HateStem forward -----------------------------

def hate_stem_forward(kp, vis_feats, vis_pe, input_ids, token_type_ids,
                      attention_mask, *, len_vis_input, n_heads):
    B, L, VD = vis_feats.shape
    PD = vis_pe.shape[2]
    S = input_ids.shape[1]
    H = kp["word_emb"].shape[1]
    NL = kp["wqkv_t"].shape[0]
    I = kp["wi"].shape[2]

    # ---- embedding-table gathers (plain JAX glue) ----
    we = kp["word_emb"][input_ids]                                    # (B, S, H)
    pe = jnp.broadcast_to(kp["pos_emb"][:S][None], (B, S, H))
    tte = kp["type_emb"][token_type_ids]
    # Visual rows 1..L of word/pos embeddings are replaced in-kernel by vf + vp,
    # so their word+pos contribution is zeroed here.
    wp = (we + pe).at[:, 1:1 + L, :].set(0.0)
    base = wp + tte                                                   # (B, S, H)

    # extended additive attention mask: (1 - mask) * -10000, shape (B, 1, S)
    mask_add = ((1.0 - attention_mask.astype(jnp.float32)) * -10000.0)[:, None, :]

    per_b3 = lambda b, l: (b, 0, 0)          # per-batch blocks
    per_l3 = lambda b, l: (l, 0, 0)          # stacked per-layer weights
    shared2 = lambda b, l: (0, 0)            # shared / resident 2-D operands

    in_specs = [
        pl.BlockSpec((1, S, H), per_b3),        # base embedding sum
        pl.BlockSpec((1, 1, S), per_b3),        # additive attention mask
        pl.BlockSpec((1, L, VD), per_b3),       # raw vis_feats
        pl.BlockSpec((1, L, PD), per_b3),       # raw vis_pe
        pl.BlockSpec((VD, 2 * H), shared2),     # vis_embed W1
        pl.BlockSpec((1, 2 * H), shared2),      # vis_embed b1
        pl.BlockSpec((2 * H, H), shared2),      # vis_embed W2
        pl.BlockSpec((1, H), shared2),          # vis_embed b2
        pl.BlockSpec((PD, H), shared2),         # vis_pe_embed W
        pl.BlockSpec((1, H), shared2),          # vis_pe_embed b
        pl.BlockSpec((1, H), shared2),          # embedding LN gamma
        pl.BlockSpec((1, H), shared2),          # embedding LN beta
        pl.BlockSpec((1, 3 * H, H), per_l3),    # wqkv^T (Q rows pre-scaled)
        pl.BlockSpec((1, 3 * H, 1), per_l3),    # bqkv^T
        pl.BlockSpec((1, H, H), per_l3),        # wo
        pl.BlockSpec((1, 1, H), per_l3),        # bo
        pl.BlockSpec((1, 1, H), per_l3),        # ln1 gamma
        pl.BlockSpec((1, 1, H), per_l3),        # ln1 beta
        pl.BlockSpec((1, H, I), per_l3),        # wi
        pl.BlockSpec((1, 1, I), per_l3),        # bi
        pl.BlockSpec((1, I, H), per_l3),        # wf
        pl.BlockSpec((1, 1, H), per_l3),        # bf
        pl.BlockSpec((1, 1, H), per_l3),        # ln2 gamma
        pl.BlockSpec((1, 1, H), per_l3),        # ln2 beta
    ]

    # Whole forward (vis_embed + emb LN + all layers + vqa2 product) in ONE
    # pallas_call.  Batch axis is "parallel" (megacore on v7x), layer axis is
    # "arbitrary" (carries the VMEM residual scratch).  At these small shapes the
    # default scoped-VMEM limits are ample; set vmem_limit_bytes if scaled to
    # real BERT dims.
    vqa2 = pl.pallas_call(
        functools.partial(_encoder_kernel, n_heads=n_heads,
                          len_vis_input=len_vis_input, eps=LN_EPS),
        out_shape=jax.ShapeDtypeStruct((B, 1, H), jnp.float32),
        grid=(B, NL),
        in_specs=in_specs,
        out_specs=pl.BlockSpec((1, 1, H), per_b3),
        scratch_shapes=[pltpu.VMEM((S, H), jnp.float32)],
        compiler_params=pltpu.CompilerParams(
            dimension_semantics=("parallel", "arbitrary")),
    )(base, mask_add, vis_feats, vis_pe,
      kp["ve_w1"], kp["ve_b1"], kp["ve_w2"], kp["ve_b2"], kp["vpe_w"], kp["vpe_b"],
      kp["emb_ln_g"], kp["emb_ln_b"],
      kp["wqkv_t"], kp["bqkv_t"], kp["wo"], kp["bo"],
      kp["ln1_g"], kp["ln1_b"], kp["wi"], kp["bi"],
      kp["wf"], kp["bf"], kp["ln2_g"], kp["ln2_b"])

    # bert() also returns pooled_output, but HateStem discards it -> not computed.
    return vqa2.reshape(B, H)


# ----------------------------- pure-JAX reference -----------------------------

def _reference_forward(params, vis_feats, vis_pe, input_ids, token_type_ids,
                       attention_mask, *, len_vis_input, n_heads):
    B, L, _ = vis_feats.shape
    S = input_ids.shape[1]
    H = params["word_emb"].shape[1]
    NL = params["wqkv"].shape[0]
    dh = H // n_heads

    def ln(x, g, b):
        mu = x.mean(-1, keepdims=True)
        var = ((x - mu) ** 2).mean(-1, keepdims=True)
        return (x - mu) / jnp.sqrt(var + LN_EPS) * g + b

    ve, vpe = params["vis_embed"], params["vis_pe_embed"]
    vf = jnp.maximum(vis_feats.reshape(B * L, -1) @ ve["w1"] + ve["b1"], 0.0)
    vf = (vf @ ve["w2"] + ve["b2"]).reshape(B, L, H)
    vp = jnp.maximum(vis_pe.reshape(B * L, -1) @ vpe["w"] + vpe["b"], 0.0).reshape(B, L, H)

    we = params["word_emb"][input_ids]
    pe = jnp.broadcast_to(params["pos_emb"][:S][None], (B, S, H))
    tte = params["type_emb"][token_type_ids]
    we = jnp.concatenate([we[:, :1], vf, we[:, 1 + L:]], axis=1)
    pe = jnp.concatenate([pe[:, :1], vp, pe[:, 1 + L:]], axis=1)
    x = ln(we + pe + tte, params["emb_ln_g"][0], params["emb_ln_b"][0])

    mask = ((1.0 - attention_mask.astype(jnp.float32)) * -10000.0)[:, None, None, :]
    for l in range(NL):
        wqkv, bqkv = params["wqkv"][l], params["bqkv"][l][0]
        q = (x @ wqkv[:, :H] + bqkv[:H]).reshape(B, S, n_heads, dh).transpose(0, 2, 1, 3)
        k = (x @ wqkv[:, H:2 * H] + bqkv[H:2 * H]).reshape(B, S, n_heads, dh).transpose(0, 2, 1, 3)
        v = (x @ wqkv[:, 2 * H:] + bqkv[2 * H:]).reshape(B, S, n_heads, dh).transpose(0, 2, 1, 3)
        s = jnp.einsum("bhqd,bhkd->bhqk", q, k) / (dh ** 0.5) + mask
        p = jax.nn.softmax(s, axis=-1)
        ctx = jnp.einsum("bhqk,bhkd->bhqd", p, v).transpose(0, 2, 1, 3).reshape(B, S, H)
        att = ctx @ params["wo"][l] + params["bo"][l][0]
        h1 = ln(att + x, params["ln1_g"][l][0], params["ln1_b"][l][0])
        ff = jax.nn.gelu(h1 @ params["wi"][l] + params["bi"][l][0], approximate=True)
        ff = ff @ params["wf"][l] + params["bf"][l][0]
        x = ln(ff + h1, params["ln2_g"][l][0], params["ln2_b"][l][0])
    return x[:, 0] * x[:, len_vis_input + 1]


# ----------------------------- demo -----------------------------

if __name__ == "__main__":
    key = jax.random.PRNGKey(0)
    kkey, kv, kpe, kid = jax.random.split(key, 4)

    # batch=2, len_vis_input=4 visual regions, total seq=16, hidden=32, heads=4,
    # vis feature dim=64, vis positional-encoding dim=16, 2 layers.
    B, L, S = 2, 4, 16
    VIS_DIM, PE_DIM, VOCAB = 64, 16, 100
    HIDDEN, N_LAYERS, N_HEADS, INTERMEDIATE = 32, 2, 4, 64

    params = init_params(kkey, vocab=VOCAB, hidden=HIDDEN, n_layers=N_LAYERS,
                         intermediate=INTERMEDIATE, vis_dim=VIS_DIM,
                         pe_dim=PE_DIM, max_pos=64, type_vocab=2)
    # one-time weight prep (transpose, scale-fold, bf16 cast) OUTSIDE the jit
    kparams = prepare_kernel_params(params, n_heads=N_HEADS)

    vis_feats = jax.random.normal(kv, (B, L, VIS_DIM), jnp.float32)
    vis_pe = jax.random.normal(kpe, (B, L, PE_DIM), jnp.float32)
    input_ids = jax.random.randint(kid, (B, S), 0, VOCAB, dtype=jnp.int32)
    token_type_ids = jnp.concatenate(
        [jnp.zeros((B, 1 + L), jnp.int32), jnp.ones((B, S - 1 - L), jnp.int32)], axis=1)
    attention_mask = jnp.ones((B, S), jnp.float32)

    fwd = jax.jit(functools.partial(hate_stem_forward,
                                    len_vis_input=L, n_heads=N_HEADS))
    out = jax.block_until_ready(fwd(kparams, vis_feats, vis_pe, input_ids,
                                    token_type_ids, attention_mask))

    assert out.shape == (B, HIDDEN) and out.dtype == jnp.float32
    assert bool(jnp.all(jnp.isfinite(out)))

    ref = _reference_forward(params, vis_feats, vis_pe, input_ids,
                             token_type_ids, attention_mask,
                             len_vis_input=L, n_heads=N_HEADS)
    err = float(jnp.max(jnp.abs(out - ref)))
    assert err < 5e-2, f"kernel/ref mismatch: max abs err = {err}"
    print("KERNEL_OK")
</pallas_src>

<mosaic_0001>
module attributes {stable_mosaic.version = 11 : i64} {
  func.func @_encoder_kernel(%arg0: i32, %arg1: i32, %arg2: memref<1x16x32xf32, #tpu.memory_space<vmem>>, %arg3: memref<1x1x16xf32, #tpu.memory_space<vmem>>, %arg4: memref<1x4x64xf32, #tpu.memory_space<vmem>>, %arg5: memref<1x4x16xf32, #tpu.memory_space<vmem>>, %arg6: memref<64x64xbf16, #tpu.memory_space<vmem>>, %arg7: memref<1x64xf32, #tpu.memory_space<vmem>>, %arg8: memref<64x32xbf16, #tpu.memory_space<vmem>>, %arg9: memref<1x32xf32, #tpu.memory_space<vmem>>, %arg10: memref<16x32xbf16, #tpu.memory_space<vmem>>, %arg11: memref<1x32xf32, #tpu.memory_space<vmem>>, %arg12: memref<1x32xf32, #tpu.memory_space<vmem>>, %arg13: memref<1x32xf32, #tpu.memory_space<vmem>>, %arg14: memref<1x96x32xbf16, #tpu.memory_space<vmem>>, %arg15: memref<1x96x1xf32, #tpu.memory_space<vmem>>, %arg16: memref<1x32x32xbf16, #tpu.memory_space<vmem>>, %arg17: memref<1x1x32xf32, #tpu.memory_space<vmem>>, %arg18: memref<1x1x32xf32, #tpu.memory_space<vmem>>, %arg19: memref<1x1x32xf32, #tpu.memory_space<vmem>>, %arg20: memref<1x32x64xbf16, #tpu.memory_space<vmem>>, %arg21: memref<1x1x64xf32, #tpu.memory_space<vmem>>, %arg22: memref<1x64x32xbf16, #tpu.memory_space<vmem>>, %arg23: memref<1x1x32xf32, #tpu.memory_space<vmem>>, %arg24: memref<1x1x32xf32, #tpu.memory_space<vmem>>, %arg25: memref<1x1x32xf32, #tpu.memory_space<vmem>>, %arg26: memref<1x1x32xf32, #tpu.memory_space<vmem>>, %arg27: memref<16x32xf32, #tpu.memory_space<vmem>>) attributes {dimension_semantics = [#tpu.dimension_semantics<parallel>, #tpu.dimension_semantics<arbitrary>], iteration_bounds = array<i64: 2, 2>, scalar_prefetch = 0 : i64, scratch_operands = 1 : i64, tpu.core_type = #tpu.core_type<tc>, window_params = [{transform_indices = @transform_0, window_bounds = array<i64: 1, 16, 32>}, {transform_indices = @transform_1, window_bounds = array<i64: 1, 1, 16>}, {transform_indices = @transform_2, window_bounds = array<i64: 1, 4, 64>}, {transform_indices = @transform_3, window_bounds = array<i64: 1, 4, 16>}, {pipeline_mode = #tpu.pipeline_mode<synchronous>, transform_indices = @transform_4, window_bounds = array<i64: 64, 64>}, {pipeline_mode = #tpu.pipeline_mode<synchronous>, transform_indices = @transform_5, window_bounds = array<i64: 1, 64>}, {pipeline_mode = #tpu.pipeline_mode<synchronous>, transform_indices = @transform_6, window_bounds = array<i64: 64, 32>}, {pipeline_mode = #tpu.pipeline_mode<synchronous>, transform_indices = @transform_7, window_bounds = array<i64: 1, 32>}, {pipeline_mode = #tpu.pipeline_mode<synchronous>, transform_indices = @transform_8, window_bounds = array<i64: 16, 32>}, {pipeline_mode = #tpu.pipeline_mode<synchronous>, transform_indices = @transform_9, window_bounds = array<i64: 1, 32>}, {pipeline_mode = #tpu.pipeline_mode<synchronous>, transform_indices = @transform_10, window_bounds = array<i64: 1, 32>}, {pipeline_mode = #tpu.pipeline_mode<synchronous>, transform_indices = @transform_11, window_bounds = array<i64: 1, 32>}, {transform_indices = @transform_12, window_bounds = array<i64: 1, 96, 32>}, {transform_indices = @transform_13, window_bounds = array<i64: 1, 96, 1>}, {transform_indices = @transform_14, window_bounds = array<i64: 1, 32, 32>}, {transform_indices = @transform_15, window_bounds = array<i64: 1, 1, 32>}, {transform_indices = @transform_16, window_bounds = array<i64: 1, 1, 32>}, {transform_indices = @transform_17, window_bounds = array<i64: 1, 1, 32>}, {transform_indices = @transform_18, window_bounds = array<i64: 1, 32, 64>}, {transform_indices = @transform_19, window_bounds = array<i64: 1, 1, 64>}, {transform_indices = @transform_20, window_bounds = array<i64: 1, 64, 32>}, {transform_indices = @transform_21, window_bounds = array<i64: 1, 1, 32>}, {transform_indices = @transform_22, window_bounds = array<i64: 1, 1, 32>}, {transform_indices = @transform_23, window_bounds = array<i64: 1, 1, 32>}, {transform_indices = @transform_24, window_bounds = array<i64: 1, 1, 32>}]} {
    %c0_i32 = arith.constant 0 : i32
    %0 = arith.cmpi eq, %arg1, %c0_i32 : i32
    %1 = arith.extui %0 : i1 to i32
    %c0_i32_0 = arith.constant 0 : i32
    %2 = arith.cmpi ne, %1, %c0_i32_0 : i32
    scf.if %2 {
      %c0_81 = arith.constant 0 : index
      %c0_82 = arith.constant 0 : index
      %c0_83 = arith.constant 0 : index
      %195 = vector.load %arg4[%c0_81, %c0_82, %c0_83] : memref<1x4x64xf32, #tpu.memory_space<vmem>>, vector<1x4x64xf32>
      %196 = vector.shape_cast %195 : vector<1x4x64xf32> to vector<4x64xf32>
      %197 = arith.truncf %196 : vector<4x64xf32> to vector<4x64xbf16>
      %c0_84 = arith.constant 0 : index
      %c0_85 = arith.constant 0 : index
      %198 = vector.load %arg6[%c0_84, %c0_85] : memref<64x64xbf16, #tpu.memory_space<vmem>>, vector<64x64xbf16>
      %cst_86 = arith.constant dense<0.000000e+00> : vector<4x64xf32>
      %199 = tpu.matmul %197, %198, %cst_86 {dimension_numbers = #tpu.dot_dimension_numbers<[1], [0], [0], [1], [0, 0, 1, 1], [], []>} : vector<4x64xbf16>, vector<64x64xbf16>, vector<4x64xf32> -> vector<4x64xf32>
      %c0_87 = arith.constant 0 : index
      %c0_88 = arith.constant 0 : index
      %200 = vector.load %arg7[%c0_87, %c0_88] : memref<1x64xf32, #tpu.memory_space<vmem>>, vector<1x64xf32>
      %201 = vector.broadcast %200 : vector<1x64xf32> to vector<4x64xf32>
      %202 = arith.addf %199, %201 : vector<4x64xf32>
      %cst_89 = arith.constant 0.000000e+00 : f32
      %203 = vector.broadcast %cst_89 : f32 to vector<4x64xf32>
      %204 = arith.maximumf %202, %203 : vector<4x64xf32>
      %205 = arith.truncf %204 : vector<4x64xf32> to vector<4x64xbf16>
      %c0_90 = arith.constant 0 : index
      %c0_91 = arith.constant 0 : index
      %206 = vector.load %arg8[%c0_90, %c0_91] : memref<64x32xbf16, #tpu.memory_space<vmem>>, vector<64x32xbf16>
      %cst_92 = arith.constant dense<0.000000e+00> : vector<4x32xf32>
      %207 = tpu.matmul %205, %206, %cst_92 {dimension_numbers = #tpu.dot_dimension_numbers<[1], [0], [0], [1], [0, 0, 1, 1], [], []>} : vector<4x64xbf16>, vector<64x32xbf16>, vector<4x32xf32> -> vector<4x32xf32>
      %c0_93 = arith.constant 0 : index
      %c0_94 = arith.constant 0 : index
      %208 = vector.load %arg9[%c0_93, %c0_94] : memref<1x32xf32, #tpu.memory_space<vmem>>, vector<1x32xf32>
      %209 = vector.broadcast %208 : vector<1x32xf32> to vector<4x32xf32>
      %210 = arith.addf %207, %209 : vector<4x32xf32>
      %c0_95 = arith.constant 0 : index
      %c0_96 = arith.constant 0 : index
      %c0_97 = arith.constant 0 : index
      %211 = vector.load %arg5[%c0_95, %c0_96, %c0_97] : memref<1x4x16xf32, #tpu.memory_space<vmem>>, vector<1x4x16xf32>
      %212 = vector.shape_cast %211 : vector<1x4x16xf32> to vector<4x16xf32>
      %213 = arith.truncf %212 : vector<4x16xf32> to vector<4x16xbf16>
      %c0_98 = arith.constant 0 : index
      %c0_99 = arith.constant 0 : index
      %214 = vector.load %arg10[%c0_98, %c0_99] : memref<16x32xbf16, #tpu.memory_space<vmem>>, vector<16x32xbf16>
      %cst_100 = arith.constant dense<0.000000e+00> : vector<4x32xf32>
      %215 = tpu.matmul %213, %214, %cst_100 {dimension_numbers = #tpu.dot_dimension_numbers<[1], [0], [0], [1], [0, 0, 1, 1], [], []>} : vector<4x16xbf16>, vector<16x32xbf16>, vector<4x32xf32> -> vector<4x32xf32>
      %c0_101 = arith.constant 0 : index
      %c0_102 = arith.constant 0 : index
      %216 = vector.load %arg11[%c0_101, %c0_102] : memref<1x32xf32, #tpu.memory_space<vmem>>, vector<1x32xf32>
      %217 = vector.broadcast %216 : vector<1x32xf32> to vector<4x32xf32>
      %218 = arith.addf %215, %217 : vector<4x32xf32>
      %cst_103 = arith.constant 0.000000e+00 : f32
      %219 = vector.broadcast %cst_103 : f32 to vector<4x32xf32>
      %220 = arith.maximumf %218, %219 : vector<4x32xf32>
      %c0_104 = arith.constant 0 : index
      %c0_105 = arith.constant 0 : index
      %c0_106 = arith.constant 0 : index
      %221 = vector.load %arg2[%c0_104, %c0_105, %c0_106] : memref<1x16x32xf32, #tpu.memory_space<vmem>>, vector<1x16x32xf32>
      %222 = vector.shape_cast %221 : vector<1x16x32xf32> to vector<16x32xf32>
      %c0_107 = arith.constant 0 : index
      %c0_108 = arith.constant 0 : index
      %223 = vector.load %arg27[%c0_107, %c0_108] : memref<16x32xf32, #tpu.memory_space<vmem>>, vector<16x32xf32>
      tpu.vector_store %arg27[%c0_107, %c0_108], %222 {strides = array<i32>} : memref<16x32xf32, #tpu.memory_space<vmem>>, vector<16x32xf32>,
      %224 = vector.extract_strided_slice %222 {offsets = [1, 0], sizes = [4, 32], strides = [1, 1]} : vector<16x32xf32> to vector<4x32xf32>
      %225 = arith.addf %224, %210 : vector<4x32xf32>
      %226 = arith.addf %225, %220 : vector<4x32xf32>
      %c1 = arith.constant 1 : index
      %c0_109 = arith.constant 0 : index
      %227 = vector.load %arg27[%c1, %c0_109] : memref<16x32xf32, #tpu.memory_space<vmem>>, vector<4x32xf32>
      tpu.vector_store %arg27[%c1, %c0_109], %226 {strides = array<i32>} : memref<16x32xf32, #tpu.memory_space<vmem>>, vector<4x32xf32>,
      %c0_110 = arith.constant 0 : index
      %c0_111 = arith.constant 0 : index
      %228 = vector.load %arg27[%c0_110, %c0_111] : memref<16x32xf32, #tpu.memory_space<vmem>>, vector<16x32xf32>
      %c0_112 = arith.constant 0 : index
      %c0_113 = arith.constant 0 : index
      %229 = vector.load %arg12[%c0_112, %c0_113] : memref<1x32xf32, #tpu.memory_space<vmem>>, vector<1x32xf32>
      %c0_114 = arith.constant 0 : index
      %c0_115 = arith.constant 0 : index
      %230 = vector.load %arg13[%c0_114, %c0_115] : memref<1x32xf32, #tpu.memory_space<vmem>>, vector<1x32xf32>
      %cst_116 = arith.constant dense<0.000000e+00> : vector<16xf32>
      %231 = vector.multi_reduction <add>, %228, %cst_116 [1] : vector<16x32xf32> to vector<16xf32>
      %232 = vector.shape_cast %231 : vector<16xf32> to vector<16x1xf32>
      %cst_117 = arith.constant 3.200000e+01 : f32
      %233 = vector.broadcast %cst_117 : f32 to vector<16x1xf32>
      %234 = arith.divf %232, %233 : vector<16x1xf32>
      %235 = vector.broadcast %234 : vector<16x1xf32> to vector<16x32xf32>
      %236 = arith.subf %228, %235 : vector<16x32xf32>
      %237 = arith.mulf %236, %236 : vector<16x32xf32>
      %cst_118 = arith.constant dense<0.000000e+00> : vector<16xf32>
      %238 = vector.multi_reduction <add>, %237, %cst_118 [1] : vector<16x32xf32> to vector<16xf32>
      %239 = vector.shape_cast %238 : vector<16xf32> to vector<16x1xf32>
      %cst_119 = arith.constant 3.200000e+01 : f32
      %240 = vector.broadcast %cst_119 : f32 to vector<16x1xf32>
      %241 = arith.divf %239, %240 : vector<16x1xf32>
      %242 = vector.broadcast %234 : vector<16x1xf32> to vector<16x32xf32>
      %243 = arith.subf %228, %242 : vector<16x32xf32>
      %cst_120 = arith.constant 9.99999996E-13 : f32
      %244 = vector.broadcast %cst_120 : f32 to vector<16x1xf32>
      %245 = arith.addf %241, %244 : vector<16x1xf32>
      %246 = math.rsqrt %245 : vector<16x1xf32>
      %247 = vector.broadcast %246 : vector<16x1xf32> to vector<16x32xf32>
      %248 = arith.mulf %243, %247 : vector<16x32xf32>
      %249 = vector.broadcast %229 : vector<1x32xf32> to vector<16x32xf32>
      %250 = arith.mulf %248, %249 : vector<16x32xf32>
      %251 = vector.broadcast %230 : vector<1x32xf32> to vector<16x32xf32>
      %252 = arith.addf %250, %251 : vector<16x32xf32>
      %c0_121 = arith.constant 0 : index
      %c0_122 = arith.constant 0 : index
      %253 = vector.load %arg27[%c0_121, %c0_122] : memref<16x32xf32, #tpu.memory_space<vmem>>, vector<16x32xf32>
      tpu.vector_store %arg27[%c0_121, %c0_122], %252 {strides = array<i32>} : memref<16x32xf32, #tpu.memory_space<vmem>>, vector<16x32xf32>,
    } else {
    }
    %c0 = arith.constant 0 : index
    %c0_1 = arith.constant 0 : index
    %3 = vector.load %arg27[%c0, %c0_1] : memref<16x32xf32, #tpu.memory_space<vmem>>, vector<16x32xf32>
    %c0_2 = arith.constant 0 : index
    %c0_3 = arith.constant 0 : index
    %c0_4 = arith.constant 0 : index
    %4 = vector.load %arg14[%c0_2, %c0_3, %c0_4] : memref<1x96x32xbf16, #tpu.memory_space<vmem>>, vector<1x96x32xbf16>
    %5 = vector.shape_cast %4 : vector<1x96x32xbf16> to vector<96x32xbf16>
    %6 = arith.truncf %3 : vector<16x32xf32> to vector<16x32xbf16>
    %cst = arith.constant dense<0.000000e+00> : vector<96x16xf32>
    %7 = tpu.matmul %5, %6, %cst {dimension_numbers = #tpu.dot_dimension_numbers<[1], [1], [0], [0], [0, 0, 1, 0], [], []>} : vector<96x32xbf16>, vector<16x32xbf16>, vector<96x16xf32> -> vector<96x16xf32>
    %c0_5 = arith.constant 0 : index
    %c0_6 = arith.constant 0 : index
    %c0_7 = arith.constant 0 : index
    %8 = vector.load %arg15[%c0_5, %c0_6, %c0_7] : memref<1x96x1xf32, #tpu.memory_space<vmem>>, vector<1x96x1xf32>
    %9 = vector.shape_cast %8 : vector<1x96x1xf32> to vector<96x1xf32>
    %10 = vector.broadcast %9 : vector<96x1xf32> to vector<96x16xf32>
    %11 = arith.addf %7, %10 : vector<96x16xf32>
    %12 = arith.truncf %11 : vector<96x16xf32> to vector<96x16xbf16>
    %c0_8 = arith.constant 0 : index
    %c0_9 = arith.constant 0 : index
    %c0_10 = arith.constant 0 : index
    %13 = vector.load %arg3[%c0_8, %c0_9, %c0_10] : memref<1x1x16xf32, #tpu.memory_space<vmem>>, vector<1x1x16xf32>
    %14 = vector.shape_cast %13 : vector<1x1x16xf32> to vector<1x16xf32>
    %15 = vector.shape_cast %14 : vector<1x16xf32> to vector<1x16xf32>
    %16 = vector.broadcast %15 : vector<1x16xf32> to vector<16x16xf32>
    %c0_11 = arith.constant 0 : index
    %c0_12 = arith.constant 0 : index
    %c0_13 = arith.constant 0 : index
    %17 = vector.load %arg16[%c0_11, %c0_12, %c0_13] : memref<1x32x32xbf16, #tpu.memory_space<vmem>>, vector<1x32x32xbf16>
    %18 = vector.shape_cast %17 : vector<1x32x32xbf16> to vector<32x32xbf16>
    %cst_14 = arith.constant 0.000000e+00 : f32
    %19 = vector.broadcast %cst_14 : f32 to vector<16x32xf32>
    %20 = vector.extract_strided_slice %12 {offsets = [0, 0], sizes = [8, 16], strides = [1, 1]} : vector<96x16xbf16> to vector<8x16xbf16>
    %21 = vector.extract_strided_slice %12 {offsets = [32, 0], sizes = [8, 16], strides = [1, 1]} : vector<96x16xbf16> to vector<8x16xbf16>
    %22 = vector.extract_strided_slice %12 {offsets = [64, 0], sizes = [8, 16], strides = [1, 1]} : vector<96x16xbf16> to vector<8x16xbf16>
    %cst_15 = arith.constant dense<0.000000e+00> : vector<16x16xf32>
    %23 = tpu.matmul %20, %21, %cst_15 {dimension_numbers = #tpu.dot_dimension_numbers<[0], [0], [1], [1], [0, 1, 1, 1], [], []>} : vector<8x16xbf16>, vector<8x16xbf16>, vector<16x16xf32> -> vector<16x16xf32>
    %24 = arith.addf %23, %16 : vector<16x16xf32>
    %cst_16 = arith.constant dense<0xFF800000> : vector<16xf32>
    %25 = vector.multi_reduction <maximumf>, %24, %cst_16 [1] : vector<16x16xf32> to vector<16xf32>
    %26 = vector.shape_cast %25 : vector<16xf32> to vector<16x1xf32>
    %27 = vector.broadcast %26 : vector<16x1xf32> to vector<16x16xf32>
    %28 = arith.subf %24, %27 : vector<16x16xf32>
    %29 = math.exp %28 : vector<16x16xf32>
    %cst_17 = arith.constant dense<0.000000e+00> : vector<16xf32>
    %30 = vector.multi_reduction <add>, %29, %cst_17 [1] : vector<16x16xf32> to vector<16xf32>
    %31 = vector.shape_cast %30 : vector<16xf32> to vector<16x1xf32>
    %32 = tpu.reciprocal %31 {approx = true} : vector<16x1xf32> -> vector<16x1xf32>
    %33 = vector.broadcast %32 : vector<16x1xf32> to vector<16x16xf32>
    %34 = arith.mulf %29, %33 : vector<16x16xf32>
    %35 = arith.truncf %34 : vector<16x16xf32> to vector<16x16xbf16>
    %cst_18 = arith.constant dense<0.000000e+00> : vector<16x8xf32>
    %36 = tpu.matmul %35, %22, %cst_18 {dimension_numbers = #tpu.dot_dimension_numbers<[1], [1], [0], [0], [0, 0, 1, 0], [], []>} : vector<16x16xbf16>, vector<8x16xbf16>, vector<16x8xf32> -> vector<16x8xf32>
    %37 = arith.truncf %36 : vector<16x8xf32> to vector<16x8xbf16>
    %38 = vector.extract_strided_slice %18 {offsets = [0, 0], sizes = [8, 32], strides = [1, 1]} : vector<32x32xbf16> to vector<8x32xbf16>
    %cst_19 = arith.constant dense<0.000000e+00> : vector<16x32xf32>
    %39 = tpu.matmul %37, %38, %cst_19 {dimension_numbers = #tpu.dot_dimension_numbers<[1], [0], [0], [1], [0, 0, 1, 1], [], []>} : vector<16x8xbf16>, vector<8x32xbf16>, vector<16x32xf32> -> vector<16x32xf32>
    %40 = arith.addf %19, %39 : vector<16x32xf32>
    %41 = vector.extract_strided_slice %12 {offsets = [8, 0], sizes = [8, 16], strides = [1, 1]} : vector<96x16xbf16> to vector<8x16xbf16>
    %42 = vector.extract_strided_slice %12 {offsets = [40, 0], sizes = [8, 16], strides = [1, 1]} : vector<96x16xbf16> to vector<8x16xbf16>
    %43 = vector.extract_strided_slice %12 {offsets = [72, 0], sizes = [8, 16], strides = [1, 1]} : vector<96x16xbf16> to vector<8x16xbf16>
    %cst_20 = arith.constant dense<0.000000e+00> : vector<16x16xf32>
    %44 = tpu.matmul %41, %42, %cst_20 {dimension_numbers = #tpu.dot_dimension_numbers<[0], [0], [1], [1], [0, 1, 1, 1], [], []>} : vector<8x16xbf16>, vector<8x16xbf16>, vector<16x16xf32> -> vector<16x16xf32>
    %45 = arith.addf %44, %16 : vector<16x16xf32>
    %cst_21 = arith.constant dense<0xFF800000> : vector<16xf32>
    %46 = vector.multi_reduction <maximumf>, %45, %cst_21 [1] : vector<16x16xf32> to vector<16xf32>
    %47 = vector.shape_cast %46 : vector<16xf32> to vector<16x1xf32>
    %48 = vector.broadcast %47 : vector<16x1xf32> to vector<16x16xf32>
    %49 = arith.subf %45, %48 : vector<16x16xf32>
    %50 = math.exp %49 : vector<16x16xf32>
    %cst_22 = arith.constant dense<0.000000e+00> : vector<16xf32>
    %51 = vector.multi_reduction <add>, %50, %cst_22 [1] : vector<16x16xf32> to vector<16xf32>
    %52 = vector.shape_cast %51 : vector<16xf32> to vector<16x1xf32>
    %53 = tpu.reciprocal %52 {approx = true} : vector<16x1xf32> -> vector<16x1xf32>
    %54 = vector.broadcast %53 : vector<16x1xf32> to vector<16x16xf32>
    %55 = arith.mulf %50, %54 : vector<16x16xf32>
    %56 = arith.truncf %55 : vector<16x16xf32> to vector<16x16xbf16>
    %cst_23 = arith.constant dense<0.000000e+00> : vector<16x8xf32>
    %57 = tpu.matmul %56, %43, %cst_23 {dimension_numbers = #tpu.dot_dimension_numbers<[1], [1], [0], [0], [0, 0, 1, 0], [], []>} : vector<16x16xbf16>, vector<8x16xbf16>, vector<16x8xf32> -> vector<16x8xf32>
    %58 = arith.truncf %57 : vector<16x8xf32> to vector<16x8xbf16>
    %59 = vector.extract_strided_slice %18 {offsets = [8, 0], sizes = [8, 32], strides = [1, 1]} : vector<32x32xbf16> to vector<8x32xbf16>
    %cst_24 = arith.constant dense<0.000000e+00> : vector<16x32xf32>
    %60 = tpu.matmul %58, %59, %cst_24 {dimension_numbers = #tpu.dot_dimension_numbers<[1], [0], [0], [1], [0, 0, 1, 1], [], []>} : vector<16x8xbf16>, vector<8x32xbf16>, vector<16x32xf32> -> vector<16x32xf32>
    %61 = arith.addf %40, %60 : vector<16x32xf32>
    %62 = vector.extract_strided_slice %12 {offsets = [16, 0], sizes = [8, 16], strides = [1, 1]} : vector<96x16xbf16> to vector<8x16xbf16>
    %63 = vector.extract_strided_slice %12 {offsets = [48, 0], sizes = [8, 16], strides = [1, 1]} : vector<96x16xbf16> to vector<8x16xbf16>
    %64 = vector.extract_strided_slice %12 {offsets = [80, 0], sizes = [8, 16], strides = [1, 1]} : vector<96x16xbf16> to vector<8x16xbf16>
    %cst_25 = arith.constant dense<0.000000e+00> : vector<16x16xf32>
    %65 = tpu.matmul %62, %63, %cst_25 {dimension_numbers = #tpu.dot_dimension_numbers<[0], [0], [1], [1], [0, 1, 1, 1], [], []>} : vector<8x16xbf16>, vector<8x16xbf16>, vector<16x16xf32> -> vector<16x16xf32>
    %66 = arith.addf %65, %16 : vector<16x16xf32>
    %cst_26 = arith.constant dense<0xFF800000> : vector<16xf32>
    %67 = vector.multi_reduction <maximumf>, %66, %cst_26 [1] : vector<16x16xf32> to vector<16xf32>
    %68 = vector.shape_cast %67 : vector<16xf32> to vector<16x1xf32>
    %69 = vector.broadcast %68 : vector<16x1xf32> to vector<16x16xf32>
    %70 = arith.subf %66, %69 : vector<16x16xf32>
    %71 = math.exp %70 : vector<16x16xf32>
    %cst_27 = arith.constant dense<0.000000e+00> : vector<16xf32>
    %72 = vector.multi_reduction <add>, %71, %cst_27 [1] : vector<16x16xf32> to vector<16xf32>
    %73 = vector.shape_cast %72 : vector<16xf32> to vector<16x1xf32>
    %74 = tpu.reciprocal %73 {approx = true} : vector<16x1xf32> -> vector<16x1xf32>
    %75 = vector.broadcast %74 : vector<16x1xf32> to vector<16x16xf32>
    %76 = arith.mulf %71, %75 : vector<16x16xf32>
    %77 = arith.truncf %76 : vector<16x16xf32> to vector<16x16xbf16>
    %cst_28 = arith.constant dense<0.000000e+00> : vector<16x8xf32>
    %78 = tpu.matmul %77, %64, %cst_28 {dimension_numbers = #tpu.dot_dimension_numbers<[1], [1], [0], [0], [0, 0, 1, 0], [], []>} : vector<16x16xbf16>, vector<8x16xbf16>, vector<16x8xf32> -> vector<16x8xf32>
    %79 = arith.truncf %78 : vector<16x8xf32> to vector<16x8xbf16>
    %80 = vector.extract_strided_slice %18 {offsets = [16, 0], sizes = [8, 32], strides = [1, 1]} : vector<32x32xbf16> to vector<8x32xbf16>
    %cst_29 = arith.constant dense<0.000000e+00> : vector<16x32xf32>
    %81 = tpu.matmul %79, %80, %cst_29 {dimension_numbers = #tpu.dot_dimension_numbers<[1], [0], [0], [1], [0, 0, 1, 1], [], []>} : vector<16x8xbf16>, vector<8x32xbf16>, vector<16x32xf32> -> vector<16x32xf32>
    %82 = arith.addf %61, %81 : vector<16x32xf32>
    %83 = vector.extract_strided_slice %12 {offsets = [24, 0], sizes = [8, 16], strides = [1, 1]} : vector<96x16xbf16> to vector<8x16xbf16>
    %84 = vector.extract_strided_slice %12 {offsets = [56, 0], sizes = [8, 16], strides = [1, 1]} : vector<96x16xbf16> to vector<8x16xbf16>
    %85 = vector.extract_strided_slice %12 {offsets = [88, 0], sizes = [8, 16], strides = [1, 1]} : vector<96x16xbf16> to vector<8x16xbf16>
    %cst_30 = arith.constant dense<0.000000e+00> : vector<16x16xf32>
    %86 = tpu.matmul %83, %84, %cst_30 {dimension_numbers = #tpu.dot_dimension_numbers<[0], [0], [1], [1], [0, 1, 1, 1], [], []>} : vector<8x16xbf16>, vector<8x16xbf16>, vector<16x16xf32> -> vector<16x16xf32>
    %87 = arith.addf %86, %16 : vector<16x16xf32>
    %cst_31 = arith.constant dense<0xFF800000> : vector<16xf32>
    %88 = vector.multi_reduction <maximumf>, %87, %cst_31 [1] : vector<16x16xf32> to vector<16xf32>
    %89 = vector.shape_cast %88 : vector<16xf32> to vector<16x1xf32>
    %90 = vector.broadcast %89 : vector<16x1xf32> to vector<16x16xf32>
    %91 = arith.subf %87, %90 : vector<16x16xf32>
    %92 = math.exp %91 : vector<16x16xf32>
    %cst_32 = arith.constant dense<0.000000e+00> : vector<16xf32>
    %93 = vector.multi_reduction <add>, %92, %cst_32 [1] : vector<16x16xf32> to vector<16xf32>
    %94 = vector.shape_cast %93 : vector<16xf32> to vector<16x1xf32>
    %95 = tpu.reciprocal %94 {approx = true} : vector<16x1xf32> -> vector<16x1xf32>
    %96 = vector.broadcast %95 : vector<16x1xf32> to vector<16x16xf32>
    %97 = arith.mulf %92, %96 : vector<16x16xf32>
    %98 = arith.truncf %97 : vector<16x16xf32> to vector<16x16xbf16>
    %cst_33 = arith.constant dense<0.000000e+00> : vector<16x8xf32>
    %99 = tpu.matmul %98, %85, %cst_33 {dimension_numbers = #tpu.dot_dimension_numbers<[1], [1], [0], [0], [0, 0, 1, 0], [], []>} : vector<16x16xbf16>, vector<8x16xbf16>, vector<16x8xf32> -> vector<16x8xf32>
    %100 = arith.truncf %99 : vector<16x8xf32> to vector<16x8xbf16>
    %101 = vector.extract_strided_slice %18 {offsets = [24, 0], sizes = [8, 32], strides = [1, 1]} : vector<32x32xbf16> to vector<8x32xbf16>
    %cst_34 = arith.constant dense<0.000000e+00> : vector<16x32xf32>
    %102 = tpu.matmul %100, %101, %cst_34 {dimension_numbers = #tpu.dot_dimension_numbers<[1], [0], [0], [1], [0, 0, 1, 1], [], []>} : vector<16x8xbf16>, vector<8x32xbf16>, vector<16x32xf32> -> vector<16x32xf32>
    %103 = arith.addf %82, %102 : vector<16x32xf32>
    %c0_35 = arith.constant 0 : index
    %c0_36 = arith.constant 0 : index
    %c0_37 = arith.constant 0 : index
    %104 = vector.load %arg17[%c0_35, %c0_36, %c0_37] : memref<1x1x32xf32, #tpu.memory_space<vmem>>, vector<1x1x32xf32>
    %105 = vector.shape_cast %104 : vector<1x1x32xf32> to vector<1x32xf32>
    %106 = vector.broadcast %105 : vector<1x32xf32> to vector<16x32xf32>
    %107 = arith.addf %103, %106 : vector<16x32xf32>
    %108 = arith.addf %107, %3 : vector<16x32xf32>
    %c0_38 = arith.constant 0 : index
    %c0_39 = arith.constant 0 : index
    %c0_40 = arith.constant 0 : index
    %109 = vector.load %arg18[%c0_38, %c0_39, %c0_40] : memref<1x1x32xf32, #tpu.memory_space<vmem>>, vector<1x1x32xf32>
    %110 = vector.shape_cast %109 : vector<1x1x32xf32> to vector<1x32xf32>
    %c0_41 = arith.constant 0 : index
    %c0_42 = arith.constant 0 : index
    %c0_43 = arith.constant 0 : index
    %111 = vector.load %arg19[%c0_41, %c0_42, %c0_43] : memref<1x1x32xf32, #tpu.memory_space<vmem>>, vector<1x1x32xf32>
    %112 = vector.shape_cast %111 : vector<1x1x32xf32> to vector<1x32xf32>
    %cst_44 = arith.constant dense<0.000000e+00> : vector<16xf32>
    %113 = vector.multi_reduction <add>, %108, %cst_44 [1] : vector<16x32xf32> to vector<16xf32>
    %114 = vector.shape_cast %113 : vector<16xf32> to vector<16x1xf32>
    %cst_45 = arith.constant 3.200000e+01 : f32
    %115 = vector.broadcast %cst_45 : f32 to vector<16x1xf32>
    %116 = arith.divf %114, %115 : vector<16x1xf32>
    %117 = vector.broadcast %116 : vector<16x1xf32> to vector<16x32xf32>
    %118 = arith.subf %108, %117 : vector<16x32xf32>
    %119 = arith.mulf %118, %118 : vector<16x32xf32>
    %cst_46 = arith.constant dense<0.000000e+00> : vector<16xf32>
    %120 = vector.multi_reduction <add>, %119, %cst_46 [1] : vector<16x32xf32> to vector<16xf32>
    %121 = vector.shape_cast %120 : vector<16xf32> to vector<16x1xf32>
    %cst_47 = arith.constant 3.200000e+01 : f32
    %122 = vector.broadcast %cst_47 : f32 to vector<16x1xf32>
    %123 = arith.divf %121, %122 : vector<16x1xf32>
    %124 = vector.broadcast %116 : vector<16x1xf32> to vector<16x32xf32>
    %125 = arith.subf %108, %124 : vector<16x32xf32>
    %cst_48 = arith.constant 9.99999996E-13 : f32
    %126 = vector.broadcast %cst_48 : f32 to vector<16x1xf32>
    %127 = arith.addf %123, %126 : vector<16x1xf32>
    %128 = math.rsqrt %127 : vector<16x1xf32>
    %129 = vector.broadcast %128 : vector<16x1xf32> to vector<16x32xf32>
    %130 = arith.mulf %125, %129 : vector<16x32xf32>
    %131 = vector.broadcast %110 : vector<1x32xf32> to vector<16x32xf32>
    %132 = arith.mulf %130, %131 : vector<16x32xf32>
    %133 = vector.broadcast %112 : vector<1x32xf32> to vector<16x32xf32>
    %134 = arith.addf %132, %133 : vector<16x32xf32>
    %135 = arith.truncf %134 : vector<16x32xf32> to vector<16x32xbf16>
    %c0_49 = arith.constant 0 : index
    %c0_50 = arith.constant 0 : index
    %c0_51 = arith.constant 0 : index
    %136 = vector.load %arg20[%c0_49, %c0_50, %c0_51] : memref<1x32x64xbf16, #tpu.memory_space<vmem>>, vector<1x32x64xbf16>
    %137 = vector.shape_cast %136 : vector<1x32x64xbf16> to vector<32x64xbf16>
    %cst_52 = arith.constant dense<0.000000e+00> : vector<16x64xf32>
    %138 = tpu.matmul %135, %137, %cst_52 {dimension_numbers = #tpu.dot_dimension_numbers<[1], [0], [0], [1], [0, 0, 1, 1], [], []>} : vector<16x32xbf16>, vector<32x64xbf16>, vector<16x64xf32> -> vector<16x64xf32>
    %c0_53 = arith.constant 0 : index
    %c0_54 = arith.constant 0 : index
    %c0_55 = arith.constant 0 : index
    %139 = vector.load %arg21[%c0_53, %c0_54, %c0_55] : memref<1x1x64xf32, #tpu.memory_space<vmem>>, vector<1x1x64xf32>
    %140 = vector.shape_cast %139 : vector<1x1x64xf32> to vector<1x64xf32>
    %141 = vector.broadcast %140 : vector<1x64xf32> to vector<16x64xf32>
    %142 = arith.addf %138, %141 : vector<16x64xf32>
    %143 = arith.mulf %142, %142 : vector<16x64xf32>
    %144 = arith.mulf %142, %143 : vector<16x64xf32>
    %cst_56 = arith.constant 4.471500e-02 : f32
    %145 = vector.broadcast %cst_56 : f32 to vector<16x64xf32>
    %146 = arith.mulf %145, %144 : vector<16x64xf32>
    %147 = arith.addf %142, %146 : vector<16x64xf32>
    %cst_57 = arith.constant 0.797884583 : f32
    %148 = vector.broadcast %cst_57 : f32 to vector<16x64xf32>
    %149 = arith.mulf %148, %147 : vector<16x64xf32>
    %150 = math.tanh %149 : vector<16x64xf32>
    %cst_58 = arith.constant 1.000000e+00 : f32
    %151 = vector.broadcast %cst_58 : f32 to vector<16x64xf32>
    %152 = arith.addf %151, %150 : vector<16x64xf32>
    %cst_59 = arith.constant 5.000000e-01 : f32
    %153 = vector.broadcast %cst_59 : f32 to vector<16x64xf32>
    %154 = arith.mulf %153, %152 : vector<16x64xf32>
    %155 = arith.mulf %142, %154 : vector<16x64xf32>
    %156 = arith.truncf %155 : vector<16x64xf32> to vector<16x64xbf16>
    %c0_60 = arith.constant 0 : index
    %c0_61 = arith.constant 0 : index
    %c0_62 = arith.constant 0 : index
    %157 = vector.load %arg22[%c0_60, %c0_61, %c0_62] : memref<1x64x32xbf16, #tpu.memory_space<vmem>>, vector<1x64x32xbf16>
    %158 = vector.shape_cast %157 : vector<1x64x32xbf16> to vector<64x32xbf16>
    %cst_63 = arith.constant dense<0.000000e+00> : vector<16x32xf32>
    %159 = tpu.matmul %156, %158, %cst_63 {dimension_numbers = #tpu.dot_dimension_numbers<[1], [0], [0], [1], [0, 0, 1, 1], [], []>} : vector<16x64xbf16>, vector<64x32xbf16>, vector<16x32xf32> -> vector<16x32xf32>
    %c0_64 = arith.constant 0 : index
    %c0_65 = arith.constant 0 : index
    %c0_66 = arith.constant 0 : index
    %160 = vector.load %arg23[%c0_64, %c0_65, %c0_66] : memref<1x1x32xf32, #tpu.memory_space<vmem>>, vector<1x1x32xf32>
    %161 = vector.shape_cast %160 : vector<1x1x32xf32> to vector<1x32xf32>
    %162 = vector.broadcast %161 : vector<1x32xf32> to vector<16x32xf32>
    %163 = arith.addf %159, %162 : vector<16x32xf32>
    %164 = arith.addf %163, %134 : vector<16x32xf32>
    %c0_67 = arith.constant 0 : index
    %c0_68 = arith.constant 0 : index
    %c0_69 = arith.constant 0 : index
    %165 = vector.load %arg24[%c0_67, %c0_68, %c0_69] : memref<1x1x32xf32, #tpu.memory_space<vmem>>, vector<1x1x32xf32>
    %166 = vector.shape_cast %165 : vector<1x1x32xf32> to vector<1x32xf32>
    %c0_70 = arith.constant 0 : index
    %c0_71 = arith.constant 0 : index
    %c0_72 = arith.constant 0 : index
    %167 = vector.load %arg25[%c0_70, %c0_71, %c0_72] : memref<1x1x32xf32, #tpu.memory_space<vmem>>, vector<1x1x32xf32>
    %168 = vector.shape_cast %167 : vector<1x1x32xf32> to vector<1x32xf32>
    %cst_73 = arith.constant dense<0.000000e+00> : vector<16xf32>
    %169 = vector.multi_reduction <add>, %164, %cst_73 [1] : vector<16x32xf32> to vector<16xf32>
    %170 = vector.shape_cast %169 : vector<16xf32> to vector<16x1xf32>
    %cst_74 = arith.constant 3.200000e+01 : f32
    %171 = vector.broadcast %cst_74 : f32 to vector<16x1xf32>
    %172 = arith.divf %170, %171 : vector<16x1xf32>
    %173 = vector.broadcast %172 : vector<16x1xf32> to vector<16x32xf32>
    %174 = arith.subf %164, %173 : vector<16x32xf32>
    %175 = arith.mulf %174, %174 : vector<16x32xf32>
    %cst_75 = arith.constant dense<0.000000e+00> : vector<16xf32>
    %176 = vector.multi_reduction <add>, %175, %cst_75 [1] : vector<16x32xf32> to vector<16xf32>
    %177 = vector.shape_cast %176 : vector<16xf32> to vector<16x1xf32>
    %cst_76 = arith.constant 3.200000e+01 : f32
    %178 = vector.broadcast %cst_76 : f32 to vector<16x1xf32>
    %179 = arith.divf %177, %178 : vector<16x1xf32>
    %180 = vector.broadcast %172 : vector<16x1xf32> to vector<16x32xf32>
    %181 = arith.subf %164, %180 : vector<16x32xf32>
    %cst_77 = arith.constant 9.99999996E-13 : f32
    %182 = vector.broadcast %cst_77 : f32 to vector<16x1xf32>
    %183 = arith.addf %179, %182 : vector<16x1xf32>
    %184 = math.rsqrt %183 : vector<16x1xf32>
    %185 = vector.broadcast %184 : vector<16x1xf32> to vector<16x32xf32>
    %186 = arith.mulf %181, %185 : vector<16x32xf32>
    %187 = vector.broadcast %166 : vector<1x32xf32> to vector<16x32xf32>
    %188 = arith.mulf %186, %187 : vector<16x32xf32>
    %189 = vector.broadcast %168 : vector<1x32xf32> to vector<16x32xf32>
    %190 = arith.addf %188, %189 : vector<16x32xf32>
    %c0_78 = arith.constant 0 : index
    %c0_79 = arith.constant 0 : index
    %191 = vector.load %arg27[%c0_78, %c0_79] : memref<16x32xf32, #tpu.memory_space<vmem>>, vector<16x32xf32>
    tpu.vector_store %arg27[%c0_78, %c0_79], %190 {strides = array<i32>} : memref<16x32xf32, #tpu.memory_space<vmem>>, vector<16x32xf32>,
    %c1_i32 = arith.constant 1 : i32
    %192 = arith.cmpi eq, %arg1, %c1_i32 : i32
    %193 = arith.extui %192 : i1 to i32
    %c0_i32_80 = arith.constant 0 : i32
    %194 = arith.cmpi ne, %193, %c0_i32_80 : i32
    scf.if %194 {
      %195 = vector.extract_strided_slice %190 {offsets = [0, 0], sizes = [1, 32], strides = [1, 1]} : vector<16x32xf32> to vector<1x32xf32>
      %196 = vector.extract_strided_slice %190 {offsets = [5, 0], sizes = [1, 32], strides = [1, 1]} : vector<16x32xf32> to vector<1x32xf32>
      %197 = arith.mulf %195, %196 : vector<1x32xf32>
      %c0_81 = arith.constant 0 : index
      %c0_82 = arith.constant 0 : index
      %c0_83 = arith.constant 0 : index
      %198 = vector.load %arg26[%c0_81, %c0_82, %c0_83] : memref<1x1x32xf32, #tpu.memory_space<vmem>>, vector<1x1x32xf32>
      %199 = vector.shape_cast %198 : vector<1x1x32xf32> to vector<1x32xf32>
      %200 = vector.shape_cast %197 : vector<1x32xf32> to vector<1x1x32xf32>
      tpu.vector_store %arg26[%c0_81, %c0_82, %c0_83], %200 {strides = array<i32>} : memref<1x1x32xf32, #tpu.memory_space<vmem>>, vector<1x1x32xf32>,
    } else {
    }
    return
  }
  func.func @transform_0(%arg0: i32, %arg1: i32) -> (i32, i32, i32) {
    %c0_i32 = arith.constant 0 : i32
    %c0_i32_0 = arith.constant 0 : i32
    %c0_i32_1 = arith.constant 0 : i32
    return %arg0, %c0_i32, %c0_i32_0 : i32, i32, i32
  }
  func.func @transform_1(%arg0: i32, %arg1: i32) -> (i32, i32, i32) {
    %c0_i32 = arith.constant 0 : i32
    %c0_i32_0 = arith.constant 0 : i32
    %c0_i32_1 = arith.constant 0 : i32
    return %arg0, %c0_i32, %c0_i32_0 : i32, i32, i32
  }
  func.func @transform_2(%arg0: i32, %arg1: i32) -> (i32, i32, i32) {
    %c0_i32 = arith.constant 0 : i32
    %c0_i32_0 = arith.constant 0 : i32
    %c0_i32_1 = arith.constant 0 : i32
    return %arg0, %c0_i32, %c0_i32_0 : i32, i32, i32
  }
  func.func @transform_3(%arg0: i32, %arg1: i32) -> (i32, i32, i32) {
    %c0_i32 = arith.constant 0 : i32
    %c0_i32_0 = arith.constant 0 : i32
    %c0_i32_1 = arith.constant 0 : i32
    return %arg0, %c0_i32, %c0_i32_0 : i32, i32, i32
  }
  func.func @transform_4(%arg0: i32, %arg1: i32) -> (i32, i32) {
    %c0_i32 = arith.constant 0 : i32
    %c0_i32_0 = arith.constant 0 : i32
    %c0_i32_1 = arith.constant 0 : i32
    return %c0_i32, %c0_i32_0 : i32, i32
  }
  func.func @transform_5(%arg0: i32, %arg1: i32) -> (i32, i32) {
    %c0_i32 = arith.constant 0 : i32
    %c0_i32_0 = arith.constant 0 : i32
    %c0_i32_1 = arith.constant 0 : i32
    return %c0_i32, %c0_i32_0 : i32, i32
  }
  func.func @transform_6(%arg0: i32, %arg1: i32) -> (i32, i32) {
    %c0_i32 = arith.constant 0 : i32
    %c0_i32_0 = arith.constant 0 : i32
    %c0_i32_1 = arith.constant 0 : i32
    return %c0_i32, %c0_i32_0 : i32, i32
  }
  func.func @transform_7(%arg0: i32, %arg1: i32) -> (i32, i32) {
    %c0_i32 = arith.constant 0 : i32
    %c0_i32_0 = arith.constant 0 : i32
    %c0_i32_1 = arith.constant 0 : i32
    return %c0_i32, %c0_i32_0 : i32, i32
  }
  func.func @transform_8(%arg0: i32, %arg1: i32) -> (i32, i32) {
    %c0_i32 = arith.constant 0 : i32
    %c0_i32_0 = arith.constant 0 : i32
    %c0_i32_1 = arith.constant 0 : i32
    return %c0_i32, %c0_i32_0 : i32, i32
  }
  func.func @transform_9(%arg0: i32, %arg1: i32) -> (i32, i32) {
    %c0_i32 = arith.constant 0 : i32
    %c0_i32_0 = arith.constant 0 : i32
    %c0_i32_1 = arith.constant 0 : i32
    return %c0_i32, %c0_i32_0 : i32, i32
  }
  func.func @transform_10(%arg0: i32, %arg1: i32) -> (i32, i32) {
    %c0_i32 = arith.constant 0 : i32
    %c0_i32_0 = arith.constant 0 : i32
    %c0_i32_1 = arith.constant 0 : i32
    return %c0_i32, %c0_i32_0 : i32, i32
  }
  func.func @transform_11(%arg0: i32, %arg1: i32) -> (i32, i32) {
    %c0_i32 = arith.constant 0 : i32
    %c0_i32_0 = arith.constant 0 : i32
    %c0_i32_1 = arith.constant 0 : i32
    return %c0_i32, %c0_i32_0 : i32, i32
  }
  func.func @transform_12(%arg0: i32, %arg1: i32) -> (i32, i32, i32) {
    %c0_i32 = arith.constant 0 : i32
    %c0_i32_0 = arith.constant 0 : i32
    %c0_i32_1 = arith.constant 0 : i32
    return %arg1, %c0_i32, %c0_i32_0 : i32, i32, i32
  }
  func.func @transform_13(%arg0: i32, %arg1: i32) -> (i32, i32, i32) {
    %c0_i32 = arith.constant 0 : i32
    %c0_i32_0 = arith.constant 0 : i32
    %c0_i32_1 = arith.constant 0 : i32
    return %arg1, %c0_i32, %c0_i32_0 : i32, i32, i32
  }
  func.func @transform_14(%arg0: i32, %arg1: i32) -> (i32, i32, i32) {
    %c0_i32 = arith.constant 0 : i32
    %c0_i32_0 = arith.constant 0 : i32
    %c0_i32_1 = arith.constant 0 : i32
    return %arg1, %c0_i32, %c0_i32_0 : i32, i32, i32
  }
  func.func @transform_15(%arg0: i32, %arg1: i32) -> (i32, i32, i32) {
    %c0_i32 = arith.constant 0 : i32
    %c0_i32_0 = arith.constant 0 : i32
    %c0_i32_1 = arith.constant 0 : i32
    return %arg1, %c0_i32, %c0_i32_0 : i32, i32, i32
  }
  func.func @transform_16(%arg0: i32, %arg1: i32) -> (i32, i32, i32) {
    %c0_i32 = arith.constant 0 : i32
    %c0_i32_0 = arith.constant 0 : i32
    %c0_i32_1 = arith.constant 0 : i32
    return %arg1, %c0_i32, %c0_i32_0 : i32, i32, i32
  }
  func.func @transform_17(%arg0: i32, %arg1: i32) -> (i32, i32, i32) {
    %c0_i32 = arith.constant 0 : i32
    %c0_i32_0 = arith.constant 0 : i32
    %c0_i32_1 = arith.constant 0 : i32
    return %arg1, %c0_i32, %c0_i32_0 : i32, i32, i32
  }
  func.func @transform_18(%arg0: i32, %arg1: i32) -> (i32, i32, i32) {
    %c0_i32 = arith.constant 0 : i32
    %c0_i32_0 = arith.constant 0 : i32
    %c0_i32_1 = arith.constant 0 : i32
    return %arg1, %c0_i32, %c0_i32_0 : i32, i32, i32
  }
  func.func @transform_19(%arg0: i32, %arg1: i32) -> (i32, i32, i32) {
    %c0_i32 = arith.constant 0 : i32
    %c0_i32_0 = arith.constant 0 : i32
    %c0_i32_1 = arith.constant 0 : i32
    return %arg1, %c0_i32, %c0_i32_0 : i32, i32, i32
  }
  func.func @transform_20(%arg0: i32, %arg1: i32) -> (i32, i32, i32) {
    %c0_i32 = arith.constant 0 : i32
    %c0_i32_0 = arith.constant 0 : i32
    %c0_i32_1 = arith.constant 0 : i32
    return %arg1, %c0_i32, %c0_i32_0 : i32, i32, i32
  }
  func.func @transform_21(%arg0: i32, %arg1: i32) -> (i32, i32, i32) {
    %c0_i32 = arith.constant 0 : i32
    %c0_i32_0 = arith.constant 0 : i32
    %c0_i32_1 = arith.constant 0 : i32
    return %arg1, %c0_i32, %c0_i32_0 : i32, i32, i32
  }
  func.func @transform_22(%arg0: i32, %arg1: i32) -> (i32, i32, i32) {
    %c0_i32 = arith.constant 0 : i32
    %c0_i32_0 = arith.constant 0 : i32
    %c0_i32_1 = arith.constant 0 : i32
    return %arg1, %c0_i32, %c0_i32_0 : i32, i32, i32
  }
  func.func @transform_23(%arg0: i32, %arg1: i32) -> (i32, i32, i32) {
    %c0_i32 = arith.constant 0 : i32
    %c0_i32_0 = arith.constant 0 : i32
    %c0_i32_1 = arith.constant 0 : i32
    return %arg1, %c0_i32, %c0_i32_0 : i32, i32, i32
  }
  func.func @transform_24(%arg0: i32, %arg1: i32) -> (i32, i32, i32) {
    %c0_i32 = arith.constant 0 : i32
    %c0_i32_0 = arith.constant 0 : i32
    %c0_i32_1 = arith.constant 0 : i32
    return %arg0, %c0_i32, %c0_i32_0 : i32, i32, i32
  }
}

</mosaic_0001>

<bundles_post_ra>
// kernel: hate_stem_forward.1
= control target key start
LH: loop header
LB: loop body
LE: loop exit
PB: predicated region body
PF: predicated region fallthrough
CT: control target
= control target key end

     0   :  { %s3945_s0 = inlined_call_operand.vmem [shape: f32[2,16,32], index: 0, kind: input, shape index: {}]   ;;  %s3946_s1 = inlined_call_operand.vmem [shape: f32[2,1,16], index: 1, kind: input, shape index: {}]   ;;  %s3947_s2 = inlined_call_operand.vmem [shape: f32[2,4,64], index: 2, kind: input, shape index: {}]   ;;  %s3948_s3 = inlined_call_operand.vmem [shape: f32[2,4,16], index: 3, kind: input, shape index: {}]   ;;  %s3949_s4 = inlined_call_operand.vmem [shape: bf16[64,64], index: 4, kind: input, shape index: {}]   ;;  %s3950_s5 = inlined_call_operand.vmem [shape: f32[1,64], index: 5, kind: input, shape index: {}]   ;;  %s3951_s6 = inlined_call_operand.vmem [shape: bf16[64,32], index: 6, kind: input, shape index: {}]   ;;  %s3952_s7 = inlined_call_operand.vmem [shape: f32[1,32], index: 7, kind: input, shape index: {}]   ;;  %s3953_s8 = inlined_call_operand.vmem [shape: bf16[16,32], index: 8, kind: input, shape index: {}]   ;;  %s3954_s9 = inlined_call_operand.vmem [shape: f32[1,32], index: 9, kind: input, shape index: {}]   ;;  %s3955_s10 = inlined_call_operand.vmem [shape: f32[1,32], index: 10, kind: input, shape index: {}]   ;;  %s3956_s11 = inlined_call_operand.vmem [shape: f32[1,32], index: 11, kind: input, shape index: {}]   ;;  %s3957_s12 = inlined_call_operand.vmem [shape: bf16[2,96,32], index: 12, kind: input, shape index: {}]   ;;  %s3958_s13 = inlined_call_operand.vmem [shape: f32[2,96,1], index: 13, kind: input, shape index: {}]   ;;  %s3959_s14 = inlined_call_operand.vmem [shape: bf16[2,32,32], index: 14, kind: input, shape index: {}]   ;;  %s3960_s15 = inlined_call_operand.vmem [shape: f32[2,1,32], index: 15, kind: input, shape index: {}]   ;;  %s3961_s16 = inlined_call_operand.vmem [shape: f32[2,1,32], index: 16, kind: input, shape index: {}]   ;;  %s3962_s17 = inlined_call_operand.vmem [shape: f32[2,1,32], index: 17, kind: input, shape index: {}]   ;;  %s3963_s18 = inlined_call_operand.vmem [shape: bf16[2,32,64], index: 18, kind: input, shape index: {}]   ;;  %s3964_s19 = inlined_call_operand.vmem [shape: f32[2,1,64], index: 19, kind: input, shape index: {}]   ;;  %s3965_s20 = inlined_call_operand.vmem [shape: bf16[2,64,32], index: 20, kind: input, shape index: {}]   ;;  %s3966_s21 = inlined_call_operand.vmem [shape: f32[2,1,32], index: 21, kind: input, shape index: {}]   ;;  %s3967_s22 = inlined_call_operand.vmem [shape: f32[2,1,32], index: 22, kind: input, shape index: {}]   ;;  %s3968_s23 = inlined_call_operand.vmem [shape: f32[2,1,32], index: 23, kind: input, shape index: {}]   ;;  %s3969_s24 = inlined_call_operand.hbm [shape: f32[2,1,32], index: 24, kind: output, shape index: {}]  }
   0x1   :  { %3988 = sst [smem:[#allocation22_spill]] %s3945_s0 }
   0x2   :  { %3989 = sst [smem:[#allocation23_spill]] %s3946_s1 }
   0x3   :  { %3990 = sst [smem:[#allocation24_spill]] %s3947_s2 }
   0x4   :  { %3991 = sst [smem:[#allocation25_spill]] %s3948_s3 }
   0x5   :  { %3992 = sst [smem:[#allocation26_spill]] %s3949_s4 }
   0x6   :  { %3993 = sst [smem:[#allocation27_spill]] %s3950_s5 }
   0x7   :  { %3994 = sst [smem:[#allocation28_spill]] %s3951_s6 }
   0x8   :  { %3995 = sst [smem:[#allocation29_spill]] %s3952_s7 }
   0x9   :  { %3996 = sst [smem:[#allocation30_spill]] %s3953_s8 }
   0xa   :  { %3997 = sst [smem:[#allocation31_spill]] %s3954_s9 }
   0xb   :  { %3998 = sst [smem:[#allocation32_spill]] %s3955_s10 }
   0xc   :  { %3999 = sst [smem:[#allocation33_spill]] %s3956_s11 }
   0xd   :  { %4000 = sst [smem:[#allocation34_spill]] %s3957_s12 }
   0xe   :  { %4001 = sst [smem:[#allocation35_spill]] %s3958_s13 }
   0xf   :  { %4002 = sst [smem:[#allocation36_spill]] %s3959_s14 }
  0x10   :  { %4003 = sst [smem:[#allocation37_spill]] %s3963_s18 }
  0x11   :  { %4004 = sst [smem:[#allocation38_spill]] %s3968_s23 }
  0x12   :  { %4005 = sst [smem:[#allocation39_spill]] %s3969_s24 }
  0x13   :  { %29 = vsyncpa [#allocation4], 0 }
  0x14   :  { %31 = vsyncpa [#allocation4 + $0x1], 0  ;;  %s3440_s5 = smov 0   ;;  %s3442_s26 = smov 0  }
  0x15   :  { %s3444_s27 = smov 0   ;;  %s3446_s28 = smov 0  }
  0x16   :  { %s3448_s6 = smov 0   ;;  %s3450_s2 = smov 0  }
  0x17   :  { %s3452_s29 = smov 0   ;;  %s3454_s0 = smov 0  }
  0x18 LB: > { %4006 = sst [smem:[#allocation6_spill]] %s3279_s5  ;;  %s2795_s7 = sadd.s32 4294967295, %s3307_s0   ;;  %s3307_s0 = sphi %s3454_s0, %s37_s0   ;;  %s3303_s29 = sphi %s3452_s29, %s4068_s29   ;;  %s3299_s2 = sphi %s3450_s2, %s4067_s2   ;;  %s3295_s6 = sphi %s3448_s6, %s4066_s6   ;;  %s3291_s28 = sphi %s3446_s28, %s4071_s28   ;;  %s3287_s27 = sphi %s3444_s27, %s4064_s27   ;;  %s3283_s26 = sphi %s3442_s26, %s4070_s26   ;;  %s3279_s5 = sphi %s3440_s5, %s4069_s5  }
  0x19   : > { %4007 = sst [smem:[#allocation7_spill]] %s3287_s27  ;;  %s2796_s30 = sadd.s32 4294967294, %s3307_s0  }
  0x1a   : > { %4008 = sst [smem:[#allocation8_spill]] %s3291_s28  ;;  %s46_s3 = sadd.s32 1, %s3299_s2 }
  0x1b   : > { %4009 = sst [smem:[#allocation9_spill]] %s3295_s6  ;;  %p47_p0 = scmp.ge.s32.totalorder %s46_s3, 2 }
  0x1c   : > { %4010 = sst [smem:[#allocation10_spill]] %s3299_s2  ;;  %s49_s25 = sadd.s32 1, %s3303_s29 }
  0x1d   : > { %4011 = sst [smem:[#allocation11_spill]] %s3303_s29  ;;  %p650_p1 = scmp.ne.s32.totalorder %s3287_s27, %s3283_s26 }
  0x1e   : > { %4012 = sst [smem:[#allocation12_spill]] %s3307_s0  ;;  %p651_p2 = scmp.eq.s32.totalorder %s2795_s7, 3 }
  0x1f   : > { %s4073_s3 = smov (%p47_p0, %s46_s3), 0  ;;  %s4075_s25 = smov (!%p47_p0, %s49_s25), %s3303_s29 }
  0x20   : > { %4013 = sst [smem:[#allocation13_spill]] %s4073_s3  ;;  %p3489_p3 = por %p651_p2, %p650_p1 }
  0x21   : > { %p656_p4 = scmp.ne.s32.totalorder %s3283_s26, %s3279_s5  ;;  %p51_p5 = scmp.ge.s32.totalorder %s4075_s25, 2 }
  0x22   : > { %s4014_s8 = scalar_select %p3489_p3, 1, 0 }
  0x23   : > { %p657_p6 = scmp.eq.s32.totalorder %s2796_s30, 3  ;;  %p2799_p7 = scmp.ge.s32.totalorder %s3307_s0, 1 }
  0x24   : > { %4015 = sst [smem:[#allocation14_spill]] %s4014_s8  ;;  %p809_p8 = scmp.lt.s32.totalorder %s3307_s0, 5 }
  0x25   : > { %s4077_s25 = smov (%p51_p5, %s4075_s25), 0  ;;  %p3499_p9 = por %p657_p6, %p656_p4 }
  0x26   : > { %4016 = sst [smem:[#allocation15_spill]] %s4077_s25  ;;  %p810_p10 = pnand %p2799_p7, %p809_p8 }
  0x27   : > { %s4017_s4 = scalar_select %p3499_p9, 1, 0 }
  0x28   : > { %s637_s1 = ssub.s32 %s3303_s29, %s4077_s25  ;;  %s640_s7 = sadd.s32 1, %s3287_s27 }
  0x29   : > { %4018 = sst [smem:[#allocation16_spill]] %s4017_s4  ;;  %p638_p11 = scmp.eq.s32.totalorder %s637_s1, 0 }
  0x2a   : > { %813 = sbr.rel (%p810_p10) target bundleno = 4894 (0x131e), region = 116 }
  0x2b   : > { %s3507_s3 = scalar_select %p638_p11, %s3287_s27, %s640_s7  }
  0x2d   : > { %4019 = sst [smem:[#allocation17_spill]] %s3507_s3 }
  0x2f   : > { %p931_p12 = scmp.lt.s32.totalorder %s3295_s6, 1  ;;  %p947_p13 = scmp.lt.s32.totalorder %s3291_s28, 1 }
  0x30   : > { %s4022_s5 = sld [smem:[#allocation22_spill]]  ;;  %s4033_s30 = sand.u32 1, %s3283_s26  }
  0x31   : > { %s3513_s2 = scalar_select %p931_p12, %s3295_s6, 1 }
  0x32   : > { %s3516_s4 = scalar_select %p947_p13, %s3291_s28, 1 }
  0x33   : > { %4020 = sst [smem:[#allocation18_spill]] %s3513_s2  ;;  %s2874_s1 = sshll.u32 %s3513_s2, 4 }
  0x34   : > { %s2802_s24 = sshll.u32 %s3513_s2, 2  ;;  %s4024_s11 = sld [smem:[#allocation24_spill]] }
  0x35   : > { %s4025_s23 = sld [smem:[#allocation25_spill]]  ;;  %s3066_s29 = smul.u32 48, %s3516_s4 }
  0x36   : > { %s3526_s0 = scalar_lea.vmem %s4022_s5, %s2874_s1  ;;  %s2875_s27 = sshll.u32 %s3516_s4, 4 }
  0x37   : > { %4023 = sst [smem:[#allocation19_spill]] %s3526_s0  ;;  %s3067_s3 = smul.u32 96, %s3516_s4 }
  0x38   : > { %s4027_s14 = sld [smem:[#allocation36_spill]]  ;;  %s989_s6 = scalar_lea.vmem %s3967_s22, %s3516_s4 }
  0x39   : > { %s4029_s12 = sld [smem:[#allocation34_spill]]  ;;  %s3598_s9 = scalar_lea.vmem [#allocation3], %s4033_s30 }
  0x3a   : > { %s3532_s10 = scalar_lea.vmem %s4024_s11, %s2802_s24  ;;  %s4030_s13 = sld [smem:[#allocation35_spill]] }
  0x3b   : > { %s3537_s25 = scalar_lea.vmem %s4025_s23, %s2802_s24  ;;  %s4031_s18 = sld [smem:[#allocation37_spill]] }
  0x3c   : > { %4026 = sst [smem:[#allocation20_spill]] %s3537_s25  ;;  %s2877_s24 = sshll.u32 %s3516_s4, 5 }
  0x3d   : > { %s4032_s5 = sld [smem:[#allocation38_spill]] }
  0x3e   : > { %s3545_s7 = scalar_lea.vmem %s4027_s14, %s2875_s27  ;;  %s986_s14 = scalar_lea.vmem %s3966_s21, %s3516_s4 }
  0x3f   : > { %4028 = sst [smem:[#allocation21_spill]] %s3545_s7  ;;  %s3550_s11 = scalar_lea.vmem %s4029_s12, %s3066_s29 }
  0x40   : > { %s3559_s2 = scalar_lea.vmem %s4030_s13, %s3067_s3  ;;  %s3582_s12 = scalar_lea.vmem %s3965_s20, %s2877_s24 }
  0x41   : > { %s3572_s8 = scalar_lea.vmem %s4031_s18, %s2875_s27  ;;  %s4034_s23 = sld [smem:[#allocation8_spill]] }
  0x43   : > { %s992_s13 = scalar_lea.vmem %s4032_s5, %s3516_s4 }
  0x47   : > { %p2812_p0 = scmp.ne.s32.totalorder %s4034_s23, 0 }
  0x48   : > { %s4035_s28 = sld [smem:[#allocation26_spill]] (!%p2812_p0) }
  0x49   : > { %997 = sbr.rel (%p2812_p0) target bundleno = 816 (0x330), region = 120  ;;  %s4037_s25 = sld [smem:[#allocation28_spill]] (!%p2812_p0) }
  0x4a   : > { %s4038_s24 = sld [smem:[#allocation20_spill]] (!%p2812_p0) }
  0x4b   : > { %s4039_s23 = sld [smem:[#allocation30_spill]] (!%p2812_p0) }
  0x4c   : > { %s4040_s29 = sld [smem:[#allocation19_spill]] (!%p2812_p0) }
  0x4d   : > { %s4042_s0 = sld [smem:[#allocation31_spill]] (!%p2812_p0) }
  0x4e   : > { %s4036_s18 = smov %s4035_s28  ;;  %v3144_v0 = vld [vmem:[%s4035_s28 + $0x18] sm:$0xff]   ;;  %v3309_v1 = vmov 0.0   ;;  %vm3310_vm0 = vmmov 0   ;;  %v998_v7 = vld [vmem:[%s3532_s10] sm:$0xf]  ;;  %vm1039_vm1 = vcmask 523264  }
  0x4f   : > { %2929 = vmatprep.subr.bf16.mxu0 %v3309_v1  ;;  %2941 = vmatprep.subr.bf16.mxu1 %v3309_v1  ;;  %v3145_v2 = vld [vmem:[%s4036_s18 + $0x10] sm:$0xff]   ;;  %v3148_v3 = vld [vmem:[%s4037_s25 + $0x18] sm:$0xff]   ;;  %v3146_v4 = vld [vmem:[%s4036_s18 + $0x8] sm:$0xff]   ;;  %v999_v8 = vpack.c.bf16 %v998_v7, %v998_v7  ;;  %vm1184_vm2 = vcmask 130048   ;;  %s4041_s28 = sld [smem:[#allocation27_spill]]  ;;  %vm1231_vm3 = vcmask 261120  }
  0x50   : > { %2930 = vmatpush3.bf16.msra.mxu0 %v3144_v0  ;;  %2937 = vmatprep.mubr.msk.bf16.mxu0 %vm3310_vm0, %v3309_v1  ;;  %v3149_v5 = vld [vmem:[%s4037_s25 + $0x10] sm:$0xff]   ;;  %v3147_v6 = vld [vmem:[%s4036_s18] sm:$0xff]   ;;  %v3151_v10 = vld [vmem:[%s4037_s25 + $0x8] sm:$0xff]   ;;  %s4043_s1 = sld [smem:[#allocation29_spill]]  ;;  %vm1242_vm4 = vcmask 258049  }
  0x51   : > { %2931 = vmatprep.subr.bf16.mxu0 %v3309_v1  ;;  %2949 = vmatprep.mubr.msk.bf16.mxu1 %vm3310_vm0, %v3309_v1  ;;  %v3150_v9 = vld [vmem:[%s4039_s23] sm:$0xff]  }
  0x52   : > { %2942 = vmatpush3.bf16.msra.mxu1 %v3148_v3  ;;  %v1167_v11 = vld [vmem:[%s4038_s24] sm:$0xf]  ;;  %v1230_v27 = vld [vmem:[%s4040_s29 + $0x8] sm:$0xff] }
  0x53   : > { %2943 = vmatprep.subr.bf16.mxu1 %v3309_v1  ;;  %v1168_v12 = vpack.c.bf16 %v1167_v11, %v1167_v11  ;;  %v3152_v13 = vld [vmem:[%s4037_s25] sm:$0xff]   ;;  %1233 = vst.msk [vmem:[#allocation2 + $0x8] sm:$0xff] %vm1231_vm3, %v1230_v27 }
  0x54   : > { %2932 = vmatpush3.bf16.msra.mxu0 %v3145_v2  ;;  %v1229_v26 = vld [vmem:[%s4040_s29] sm:$0xff]  ;;  %s4044_s29 = sld [smem:[#allocation32_spill]] }
  0x55   : > { %2933 = vmatprep.subr.bf16.mxu0 %v3309_v1  ;;  %v2813_v14 = vld [vmem:[%s4041_s28] ss:$0 sm:$0xff]  ;;  %1232 = vst.msk [vmem:[#allocation2] sm:$0xff] %vm1231_vm3, %v1229_v26  ;;  %s4045_s28 = sld [smem:[#allocation33_spill]] }
  0x56   : > { %2944 = vmatpush3.bf16.msra.mxu1 %v3149_v5  ;;  %v2825_v28 = vld [vmem:[%s4042_s0] ss:$0 sm:$0xff] }
  0x57   : > { %2945 = vmatprep.subr.bf16.mxu1 %v3309_v1  ;;  %v2819_v30 = vld [vmem:[%s4043_s1] ss:$0 sm:$0xff] }
  0x58   : > { %2934 = vmatpush3.bf16.msra.mxu0 %v3146_v4 }
  0x59   : > { %2935 = vmatprep.subr.bf16.mxu0 %v3309_v1 }
  0x5a   : > { %2946 = vmatpush3.bf16.msra.mxu1 %v3151_v10  ;;  %v1245_v42 = vld [vmem:[#allocation2 + $0x8] sm:$0xff]  ;;  %v2828_v62 = vld [vmem:[%s4044_s29] ss:$0 sm:$0xff] }
  0x5b   : > { %2947 = vmatprep.subr.bf16.mxu1 %v3309_v1  ;;  %v1251_v44 = vsel %vm1231_vm3, %v1245_v42, 0.0  ;;  %v2829_v0 = vld [vmem:[%s4045_s28] ss:$0 sm:$0xff] }
  0x5c   : > { %2936 = vmatpush3.bf16.msra.mxu0 %v3147_v6 }
  0x5d   : > { %2953 = vmatprep.subr.bf16.mxu0 %v3309_v1 }
  0x5e   : > { %2948 = vmatpush3.bf16.msra.mxu1 %v3152_v13 }
  0x5f   : > { %2938 = vmatmul.mubr.msk.bf16.vlgmr.msra.gmra.mxu0 %vm1039_vm1, %v999_v8 }
  0x60   : > { %2954 = vmatpush3.bf16.msra.mxu0 %v3150_v9  ;;  %2955 = vmatprep.mubr.msk.bf16.mxu0 %vm3310_vm0, %v3309_v1 }
  0x67   : > { %2956 = vmatmul.mubr.msk.bf16.vlgmr.msra.gmra.mxu0 %vm1184_vm2, %v1168_v12 }
 0x11f   : > { %v1077_v15 = vpop.f32.mrf.mxu0 }
 0x120   : > { %v1078_v16 = vadd.f32 %v2813_v14, %v1077_v15 }
 0x121   : > { %v2939_v17 = vpop.f32.mrf.mxu0 }
 0x122   : > { %v1083_v18 = vmax.f32 %v1078_v16, 0.0 }
 0x123   : > { %v1080_v19 = vpop.f32.mrf.mxu0 }
 0x124   : > { %v1084_v20 = vpack.c.bf16 %v1083_v18, %v1083_v18 }
 0x125   : > { %v2940_v21 = vpop.f32.mrf.mxu0 }
 0x126   : > { %2950 = vmatmul.mubr.msk.bf16.vlgmr.msra.gmra.mxu1 %vm1039_vm1, %v1084_v20 }
 0x127   : > { %v1222_v22 = vpop.f32.mrf.mxu0 }
 0x128   : > { %v1223_v29 = vadd.f32 %v2825_v28, %v1222_v22 }
 0x129   : > { %v2957_v23 = vpop.f32.mrf.mxu0 }
 0x12a   : > { %v1228_v31 = vmax.f32 %v1223_v29, 0.0 }
 0x12b   : > { %v1225_v24 = vpop.f32.mrf.mxu0 }
 0x12c   : > { %v1239_v35 = vrot.slane %v1228_v31, 7 }
 0x12d   : > { %v2958_v25 = vpop.f32.mrf.mxu0 }
 0x1e6   : > { %v1161_v32 = vpop.f32.mrf.mxu1 }
 0x1e7   : > { %v1162_v33 = vadd.f32 %v2819_v30, %v1161_v32 }
 0x1e8   : > { %v2951_v34 = vpop.f32.mrf.mxu1 }
 0x1e9   : > { %v1235_v36 = vrot.slane %v1162_v33, 7 }
 0x1ea   : > { %v1164_v37 = vpop.f32.mrf.mxu1 }
 0x1eb   : > { %v1237_v38 = vadd.f32 %v1235_v36, %v1229_v26 }
 0x1ec   : > { %v2952_v39 = vpop.f32.mrf.mxu1 }
 0x1ed   : > { %v1241_v40 = vadd.f32 %v1239_v35, %v1237_v38 }
 0x1ef   : > { %1243 = vst.msk [vmem:[#allocation2] sm:$0x1e] %vm1242_vm4, %v1241_v40 }
 0x1f6   : > { %v1244_v41 = vld [vmem:[#allocation2] sm:$0xff] }
 0x1f7   : > { %v1248_v43 = vsel %vm1231_vm3, %v1244_v41, 0.0 }
 0x1f8   : > { %1249 = vadd.xlane.f32.xlu0 %v1248_v43 }
 0x1fc   : > { %1252 = vadd.xlane.f32.xlu0 %v1251_v44 }
 0x281   : > { %v1250_v45 = vpop.xlane.xlu0 %1249 }
 0x282   : > { %v1255_v46 = vmul.f32 0.03125, %v1250_v45 }
 0x284   : > { %v1257_v47 = vsub.f32 %v1244_v41, %v1255_v46 }
 0x285   : > { %v1253_v48 = vpop.xlane.xlu0 %1252 }
 0x286   : > { %v1256_v49 = vmul.f32 0.03125, %v1253_v48  ;;  %v1259_v50 = vmul.f32 %v1257_v47, %v1257_v47 }
 0x288   : > { %v1258_v51 = vsub.f32 %v1245_v42, %v1256_v49  ;;  %v1261_v52 = vsel %vm1231_vm3, %v1259_v50, 0.0 }
 0x289   : > { %1262 = vadd.xlane.f32.xlu1 %v1261_v52 }
 0x28a   : > { %v1260_v53 = vmul.f32 %v1258_v51, %v1258_v51 }
 0x28c   : > { %v1264_v54 = vsel %vm1231_vm3, %v1260_v53, 0.0 }
 0x28d   : > { %1265 = vadd.xlane.f32.xlu1 %v1264_v54 }
 0x312   : > { %v1263_v55 = vpop.xlane.xlu1 %1262 }
 0x313   : > { %v1267_v56 = vmul.f32 0.03125, %v1263_v55 }
 0x315   : > { %v1269_v57 = vadd.f32 1e-12, %v1267_v56 }
 0x316   : > { %v1266_v58 = vpop.xlane.xlu1 %1265 }
 0x317   : > { %3153 = vrsqrt.f32 %v1269_v57  ;;  %v1268_v59 = vmul.f32 0.03125, %v1266_v58 }
 0x319   : > { %v1270_v60 = vadd.f32 1e-12, %v1268_v59 }
 0x31b   : > { %3155 = vrsqrt.f32 %v1270_v60 }
 0x324   : > { %v3154_v61 = vpop.eup %3153 }
 0x325   : > { %v1273_v63 = vmul.f32 %v3154_v61, %v1257_v47 }
 0x327   : > { %v1281_v1 = vmul.f32 %v2828_v62, %v1273_v63 }
 0x328   : > { %v3156_v2 = vpop.eup %3155 }
 0x329   : > { %v1289_v3 = vadd.f32 %v2829_v0, %v1281_v1  ;;  %v1274_v4 = vmul.f32 %v3156_v2, %v1258_v51 }
 0x32b   : > { %1291 = vst.msk [vmem:[#allocation2] sm:$0xff] %vm1231_vm3, %v1289_v3  ;;  %v1282_v5 = vmul.f32 %v2828_v62, %v1274_v4 }
 0x32d   : > { %v1290_v6 = vadd.f32 %v2829_v0, %v1282_v5 }
 0x32f   : > { %1292 = vst.msk [vmem:[#allocation2 + $0x8] sm:$0xff] %vm1231_vm3, %v1290_v6 }
 0x330 PF: > { %vm1410_vm5 = vcmask 261120   ;;  %v3159_v10 = vld [vmem:[%s3550_s11] sm:$0xff]   ;;  %v3311_v11 = vmov 0   ;;  %v3160_v14 = vld [vmem:[%s3550_s11 + $0x8] sm:$0xff]   ;;  %v3161_v18 = vld [vmem:[%s3550_s11 + $0x10] sm:$0xff]   ;;  %v3312_v20 = vmov 0.0   ;;  %s4050_s10 = scalar_lea.vmem %s3960_s15, %s3516_s4  ;;  %s4052_s28 = scalar_lea.vmem %s3962_s17, %s3516_s4 }
 0x331   : > { %3157 = vset.pattern.permute.xlu0 %v3311_v11  ;;  %3158 = vset.pattern.permute.xlu1 %v3311_v11  ;;  %v1308_v12 = vld [vmem:[%s3559_s2] sm:$0xff]  ;;  %v1309_v15 = vld [vmem:[%s3559_s2 + $0x8] sm:$0xff]  ;;  %v3162_v19 = vld [vmem:[%s3550_s11 + $0x18] sm:$0xff]   ;;  %vm3313_vm6 = vmmov 0   ;;  %vm1550_vm7 = vcmask 1043456   ;;  %vm1546_vm8 = vcmask 64512   ;;  %s4053_s7 = scalar_lea.vmem %s3964_s19, %s3516_s4 }
 0x332   : > { %v3660_v7 = vld [vmem:[#allocation2] sm:$0xff]  ;;  %2961 = vmatprep.mubr.msk.bf16.mxu0 %vm1410_vm5, %v3159_v10  ;;  %1322 = vperm.xlu0 %3157, %v1308_v12   ;;  %v1313_v17 = vld [vmem:[%s3559_s2 + $0x28] sm:$0xff]  ;;  %s4047_s0 = sld [smem:[#allocation23_spill]]  ;;  %vm1595_vm9 = vcmask 130048   ;;  %vm2457_vm10 = vcmask 523264  }
 0x333   : > { %v1312_v16 = vld [vmem:[%s3559_s2 + $0x20] sm:$0xff]  ;;  %v3164_v22 = vld [vmem:[%s3550_s11 + $0x28] sm:$0xff]   ;;  %2979 = vmatprep.subr.bf16.mxu1 %v3312_v20  ;;  %2981 = vmatprep.mubr.msk.bf16.mxu1 %vm3313_vm6, %v3312_v20  ;;  %s4049_s5 = sld [smem:[#allocation21_spill]] }
 0x334   : > { %1342 = vperm.xlu1 %3158, %v1312_v16   ;;  %v3163_v21 = vld [vmem:[%s3550_s11 + $0x20] sm:$0xff]   ;;  %s4046_s11 = sld [smem:[#allocation18_spill]]  ;;  %v1317_v3 = vld [vmem:[%s3559_s2 + $0x48] sm:$0xff] }
 0x335   : > { %v1316_v56 = vld [vmem:[%s3559_s2 + $0x40] sm:$0xff] }
 0x336   : > { %v3662_v8 = vld [vmem:[#allocation2 + $0x8] sm:$0xff]  ;;  %1327 = vperm.xlu0 %3157, %v1309_v15  }
 0x337   : > { %v1307_v9 = vpack.c.bf16 %v3662_v8, %v3660_v7 }
 0x338   : > { %1347 = vperm.xlu1 %3158, %v1313_v17  }
 0x339   : > { %3065 = vmatprep.subr.msk.bf16.mxu0 %vm1410_vm5, %v1307_v9  ;;  %v1430_v13 = vsel %vm1410_vm5, %v1307_v9, 0 }
 0x33a   : > { %2960 = vmatpush3.bf16.xpose.msra.mxu0 %v1430_v13  ;;  %s4048_s23 = scalar_lea.vmem %s4047_s0, %s4046_s11 }
 0x33b   : > { %2973 = vmatprep.subr.bf16.mxu0 %v3312_v20  ;;  %v3715_v47 = vld [vmem:[%s4048_s23] ss:$0 sm:$0xff] }
 0x341   : > { %2962 = vmatmul.mubr.msk.bf16.vlgmr.msra.gmra.mxu0 %vm1410_vm5, %v3160_v14 }
 0x342   : > { %2965 = vmatprep.mubr.msk.bf16.mxu0 %vm1410_vm5, %v3161_v18 }
 0x349   : > { %2966 = vmatmul.mubr.msk.bf16.gmra.mxu0 %vm1410_vm5, %v3162_v19 }
 0x34a   : > { %2969 = vmatprep.mubr.msk.bf16.mxu0 %vm1410_vm5, %v3163_v21 }
 0x351   : > { %2970 = vmatmul.mubr.msk.bf16.gmra.mxu0 %vm1410_vm5, %v3164_v22 }
 0x352   : > { %2975 = vmatprep.mubr.msk.bf16.mxu0 %vm3313_vm6, %v3312_v20 }
 0x3ad   : > { %v1323_v23 = vpop.permute.xlu0 %1322 }
 0x3af   : > { %v1343_v27 = vpop.permute.xlu1 %1342 }
 0x3b1   : > { %v1328_v28 = vpop.permute.xlu0 %1327 }
 0x3b3   : > { %v1348_v36 = vpop.permute.xlu1 %1347 }
 0x401   : > { %v3690_v24 = vpop.f32.mrf.mxu0 }
 0x403   : > { %v1466_v25 = vpop.f32.mrf.mxu0 }
 0x404   : > { %v1467_v30 = vadd.f32 %v1466_v25, %v1323_v23 }
 0x405   : > { %v3692_v26 = vpop.f32.mrf.mxu0 }
 0x407   : > { %v1469_v29 = vpop.f32.mrf.mxu0 }
 0x408   : > { %v1470_v31 = vadd.f32 %v1469_v29, %v1328_v28 }
 0x409   : > { %v3694_v32 = vpop.f32.mrf.mxu0 }
 0x40a   : > { %v1513_v33 = vpack.c.bf16 %v1470_v31, %v1467_v30 }
 0x40b   : > { %v1482_v34 = vpop.f32.mrf.mxu0 }
 0x40c   : > { %1530 = vxpose.xlu0.c.b16.start.end [1/1] (short) (narrow) %v1513_v33, 16  ;;  %v1483_v37 = vadd.f32 %v1482_v34, %v1343_v27  ;;  %v1668_v4 = vrot.slane %v1513_v33, 4 }
 0x40d   : > { %v3696_v35 = vpop.f32.mrf.mxu0 }
 0x40f   : > { %v1485_v38 = vpop.f32.mrf.mxu0 }
 0x410   : > { %v1486_v39 = vadd.f32 %v1485_v38, %v1348_v36 }
 0x411   : > { %v3706_v43 = vpop.f32.mrf.mxu0 }
 0x412   : > { %v3698_v40 = vpack.c.bf16 %v1486_v39, %v1483_v37 }
 0x413   : > { %v1498_v44 = vpop.f32.mrf.mxu0 }
 0x414   : > { %v1552_v41 = vsel %vm1550_vm7, %v3698_v40, 0  ;;  %v1687_v17 = vrot.slane %v3698_v40, 4 }
 0x415   : > { %2974 = vmatpush3.bf16.msra.mxu0 %v1552_v41  ;;  %v3708_v45 = vpop.f32.mrf.mxu0 }
 0x416   : > { %2997 = vmatprep.subr.bf16.mxu0 %v3312_v20  ;;  %v1692_v22 = vsel %vm1550_vm7, %v1687_v17, 0 }
 0x417   : > { %v1501_v46 = vpop.f32.mrf.mxu0 }
 0x46e   : > { %v1538_v42 = vpop.trf.xlu0 }
 0x46f   : > { %2976 = vmatmul.mubr.msk.bf16.vlgmr.msra.gmra.mxu0 %vm1546_vm8, %v1538_v42 }
 0x470   : > { %2999 = vmatprep.mubr.msk.bf16.mxu0 %vm3313_vm6, %v3312_v20 }
 0x52f   : > { %v1588_v48 = vpop.f32.mrf.mxu0 }
 0x530   : > { %v1589_v49 = vadd.f32 %v3715_v47, %v1588_v48 }
 0x531   : > { %v2977_v50 = vpop.f32.mrf.mxu0 }
 0x532   : > { %v1596_v51 = vsel %vm1595_vm9, %v1589_v49, -inf }
 0x533   : > { %1597 = vmax.xlane.f32.xlu1 %v1596_v51  ;;  %v1591_v52 = vpop.f32.mrf.mxu0 }
 0x534   : > { %v1592_v53 = vadd.f32 %v3715_v47, %v1591_v52 }
 0x535   : > { %v2978_v54 = vpop.f32.mrf.mxu0 }
 0x536   : > { %v1599_v55 = vsel %vm1595_vm9, %v1592_v53, -inf }
 0x537   : > { %1600 = vmax.xlane.f32.xlu0 %v1599_v55 }
 0x54d   : > { %1362 = vperm.xlu0 %3157, %v1316_v56   ;;  %v1311_v56 = vld [vmem:[%s3559_s2 + $0x18] sm:$0xff] }
 0x5bc   : > { %v1598_v57 = vpop.xlane.xlu1 %1597 }
 0x5bd   : > { %v1602_v58 = vsub.f32 %v1589_v49, %v1598_v57  ;;  %v1315_v57 = vld [vmem:[%s3559_s2 + $0x38] sm:$0xff] }
 0x5bf   : > { %v1604_v59 = vmul.f32 1.442695, %v1602_v58  ;;  %v1310_v58 = vld [vmem:[%s3559_s2 + $0x10] sm:$0xff] }
 0x5c0   : > { %v1601_v60 = vpop.xlane.xlu0 %1600 }
 0x5c1   : > { %3171 = vpow2.f32 %v1604_v59  ;;  %v1603_v61 = vsub.f32 %v1592_v53, %v1601_v60  ;;  %v1314_v59 = vld [vmem:[%s3559_s2 + $0x30] sm:$0xff]  ;;  %v1527_v60 = vld [vmem:[%s4049_s5 + $0x4] sm:$0xf] }
 0x5c3   : > { %v1606_v62 = vmul.f32 1.442695, %v1603_v61  ;;  %v1812_v61 = vsel %vm1550_vm7, %v1527_v60, 0 }
 0x5c4   : > { %2998 = vmatpush3.bf16.msra.mxu0 %v1812_v61 }
 0x5c5   : > { %3173 = vpow2.f32 %v1606_v62  ;;  %3009 = vmatprep.subr.bf16.mxu0 %v3312_v20 }
 0x5c8   : > { %v1363_v9 = vpop.permute.xlu0 %1362 }
 0x5c9   : > { %v1499_v11 = vadd.f32 %v1498_v44, %v1363_v9  ;;  %v1526_v9 = vld [vmem:[%s4049_s5] sm:$0xf] }
 0x5ce   : > { %v3172_v63 = vpop.eup %3171 }
 0x5cf   : > { %v1608_v0 = vsel %vm1595_vm9, %v3172_v63, 0.0 }
 0x5d0   : > { %1609 = vadd.xlane.f32.xlu1 %v1608_v0 }
 0x5d2   : > { %v3174_v1 = vpop.eup %3173 }
 0x5d3   : > { %v1611_v2 = vsel %vm1595_vm9, %v3174_v1, 0.0 }
 0x5d4   : > { %1612 = vadd.xlane.f32.xlu1 %v1611_v2 }
 0x5e5   : > { %1367 = vperm.xlu1 %3158, %v1317_v3  }
 0x608   : > { %1670 = vxpose.xlu1.c.b16.start.end [1/1] (short) (narrow) %v1668_v4, 16 }
 0x659   : > { %v1610_v5 = vpop.xlane.xlu1 %1609 }
 0x65a   : > { %3175 = vrcp.f32 %v1610_v5 }
 0x65d   : > { %v1613_v6 = vpop.xlane.xlu1 %1612 }
 0x65e   : > { %3177 = vrcp.f32 %v1613_v6 }
 0x661   : > { %v1368_v10 = vpop.permute.xlu1 %1367 }
 0x662   : > { %v1502_v12 = vadd.f32 %v1501_v46, %v1368_v10 }
 0x664   : > { %v1517_v13 = vpack.c.bf16 %v1502_v12, %v1499_v11 }
 0x666   : > { %v1623_v14 = vsel %vm1595_vm9, %v1517_v13, 0  ;;  %v1759_v23 = vrot.slane %v1517_v13, 4  ;;  %v1859_v13 = vsel %vm1550_vm7, %v1526_v9, 0 }
 0x667   : > { %2980 = vmatpush3.bf16.xpose.msra.mxu1 %v1623_v14  ;;  %v3176_v15 = vpop.eup %3175 }
 0x668   : > { %2985 = vmatprep.subr.bf16.mxu1 %v3312_v20  ;;  %v1616_v18 = vmul.f32 %v3176_v15, %v3172_v63  ;;  %v1764_v27 = vsel %vm1595_vm9, %v1759_v23, 0 }
 0x66a   : > { %v1678_v25 = vpop.trf.xlu1 }
 0x66b   : > { %v3178_v16 = vpop.eup %3177 }
 0x66c   : > { %v1617_v19 = vmul.f32 %v3178_v16, %v3174_v1 }
 0x66e   : > { %v1618_v21 = vpack.c.bf16 %v1617_v19, %v1616_v18 }
 0x670   : > { %2982 = vmatmul.mubr.msk.bf16.vlgmr.msra.gmra.mxu1 %vm1595_vm9, %v1618_v21 }
 0x671   : > { %2986 = vmatpush3.bf16.msra.mxu1 %v1692_v22  ;;  %2987 = vmatprep.mubr.msk.bf16.mxu1 %vm3313_vm6, %v3312_v20 }
 0x672   : > { %2991 = vmatprep.subr.bf16.mxu1 %v3312_v20 }
 0x678   : > { %2988 = vmatmul.mubr.msk.bf16.vlgmr.msra.gmra.mxu1 %vm1546_vm8, %v1678_v25 }
 0x679   : > { %2992 = vmatpush3.bf16.xpose.msra.mxu1 %v1764_v27  ;;  %2993 = vmatprep.mubr.msk.bf16.mxu1 %vm3313_vm6, %v3312_v20 }
 0x67a   : > { %3003 = vmatprep.subr.bf16.mxu1 %v3312_v20 }
 0x730   : > { %v3738_v28 = vpop.f32.mrf.mxu1 }
 0x732   : > { %v2983_v29 = vpop.f32.mrf.mxu1 }
 0x734   : > { %v1662_v30 = vpop.f32.mrf.mxu1 }
 0x735   : > { %v1666_v31 = vpack.c.bf16 %v1662_v30, %v3738_v28 }
 0x736   : > { %v2984_v33 = vpop.f32.mrf.mxu1 }
 0x738   : > { %v1728_v34 = vpop.f32.mrf.mxu1 }
 0x739   : > { %v1729_v36 = vadd.f32 %v3715_v47, %v1728_v34 }
 0x73a   : > { %v2989_v37 = vpop.f32.mrf.mxu1 }
 0x73b   : > { %v1735_v38 = vsel %vm1595_vm9, %v1729_v36, -inf }
 0x73c   : > { %1736 = vmax.xlane.f32.xlu0 %v1735_v38  ;;  %v1731_v39 = vpop.f32.mrf.mxu1 }
 0x73d   : > { %v1732_v40 = vadd.f32 %v3715_v47, %v1731_v39 }
 0x73e   : > { %v2990_v41 = vpop.f32.mrf.mxu1 }
 0x73f   : > { %v1738_v42 = vsel %vm1595_vm9, %v1732_v40, -inf }
 0x740   : > { %1739 = vmax.xlane.f32.xlu0 %v1738_v42 }
 0x7c5   : > { %v1737_v44 = vpop.xlane.xlu0 %1736 }
 0x7c6   : > { %v1741_v46 = vsub.f32 %v1729_v36, %v1737_v44  ;;  %v1318_v44 = vld [vmem:[%s3559_s2 + $0x50] sm:$0xff] }
 0x7c8   : > { %v1743_v48 = vmul.f32 1.442695, %v1741_v46 }
 0x7c9   : > { %v1740_v49 = vpop.xlane.xlu0 %1739 }
 0x7ca   : > { %3179 = vpow2.f32 %v1743_v48  ;;  %v1742_v50 = vsub.f32 %v1732_v40, %v1740_v49 }
 0x7cc   : > { %v1745_v51 = vmul.f32 1.442695, %v1742_v50 }
 0x7ce   : > { %3181 = vpow2.f32 %v1745_v51 }
 0x7d7   : > { %v3180_v52 = vpop.eup %3179 }
 0x7d8   : > { %v1747_v53 = vsel %vm1595_vm9, %v3180_v52, 0.0 }
 0x7d9   : > { %1748 = vadd.xlane.f32.xlu1 %v1747_v53 }
 0x7db   : > { %v3182_v54 = vpop.eup %3181 }
 0x7dc   : > { %v1750_v55 = vsel %vm1595_vm9, %v3182_v54, 0.0 }
 0x7dd   : > { %1751 = vadd.xlane.f32.xlu0 %v1750_v55 }
 0x7ea   : > { %1337 = vperm.xlu1 %3158, %v1311_v56  }
 0x7ee   : > { %1357 = vperm.xlu1 %3158, %v1315_v57   ;;  %v1319_v57 = vld [vmem:[%s3559_s2 + $0x58] sm:$0xff] }
 0x7f3   : > { %1332 = vperm.xlu0 %3157, %v1310_v58  }
 0x7f7   : > { %1352 = vperm.xlu0 %3157, %v1314_v59  }
 0x862   : > { %v1749_v62 = vpop.xlane.xlu1 %1748 }
 0x863   : > { %3183 = vrcp.f32 %v1749_v62 }
 0x866   : > { %v1752_v63 = vpop.xlane.xlu0 %1751  ;;  %v1338_v0 = vpop.permute.xlu1 %1337 }
 0x867   : > { %3185 = vrcp.f32 %v1752_v63  ;;  %v1478_v2 = vadd.f32 %v3692_v26, %v1338_v0 }
 0x86a   : > { %v1358_v26 = vpop.permute.xlu1 %1357 }
 0x86b   : > { %v1494_v16 = vadd.f32 %v3696_v35, %v1358_v26 }
 0x86e   : > { %v1333_v1 = vpop.permute.xlu0 %1332 }
 0x86f   : > { %v1475_v3 = vadd.f32 %v3690_v24, %v1333_v1 }
 0x870   : > { %v3184_v5 = vpop.eup %3183 }
 0x871   : > { %v3756_v4 = vpack.c.bf16 %v1478_v2, %v1475_v3  ;;  %v1755_v10 = vmul.f32 %v3184_v5, %v3180_v52 }
 0x872   : > { %v1353_v24 = vpop.permute.xlu0 %1352 }
 0x873   : > { %1902 = vxpose.xlu0.c.b16.start.end [1/1] (short) (narrow) %v3756_v4, 16  ;;  %v1491_v14 = vadd.f32 %v3694_v32, %v1353_v24  ;;  %v2086_v58 = vrot.slane %v3756_v4, 4 }
 0x874   : > { %v3186_v6 = vpop.eup %3185 }
 0x875   : > { %v1756_v11 = vmul.f32 %v3186_v6, %v3182_v54  ;;  %v3770_v18 = vpack.c.bf16 %v1494_v16, %v1491_v14 }
 0x877   : > { %v1757_v12 = vpack.c.bf16 %v1756_v11, %v1755_v10  ;;  %v1922_v23 = vsel %vm1550_vm7, %v3770_v18, 0  ;;  %v2105_v5 = vrot.slane %v3770_v18, 4  ;;  %v1528_v11 = vld [vmem:[%s4049_s5 + $0x8] sm:$0xf] }
 0x879   : > { %2994 = vmatmul.mubr.msk.bf16.vlgmr.msra.gmra.mxu1 %vm1595_vm9, %v1757_v12  ;;  %v2040_v12 = vsel %vm1550_vm7, %v1528_v11, 0 }
 0x87a   : > { %3004 = vmatpush3.bf16.msra.mxu1 %v1859_v13  ;;  %3005 = vmatprep.mubr.msk.bf16.mxu1 %vm3313_vm6, %v3312_v20 }
 0x87b   : > { %3015 = vmatprep.subr.bf16.mxu1 %v3312_v20 }
 0x881   : > { %3006 = vmatmul.mubr.msk.bf16.vlgmr.msra.gmra.mxu1 %vm1546_vm8, %v1666_v31 }
 0x882   : > { %3017 = vmatprep.mubr.msk.bf16.mxu1 %vm3313_vm6, %v3312_v20 }
 0x8d5   : > { %v1910_v27 = vpop.trf.xlu0 }
 0x939   : > { %v1800_v15 = vpop.f32.mrf.mxu1 }
 0x93b   : > { %v2995_v17 = vpop.f32.mrf.mxu1 }
 0x93d   : > { %v1803_v19 = vpop.f32.mrf.mxu1 }
 0x93e   : > { %v1807_v21 = vpack.c.bf16 %v1803_v19, %v1800_v15 }
 0x93f   : > { %v2996_v22 = vpop.f32.mrf.mxu1 }
 0x940   : > { %3000 = vmatmul.mubr.msk.bf16.vlgmr.msra.gmra.mxu0 %vm1546_vm8, %v1807_v21 }
 0x941   : > { %3010 = vmatpush3.bf16.msra.mxu0 %v1922_v23  ;;  %v3775_v25 = vpop.f32.mrf.mxu1  ;;  %3011 = vmatprep.mubr.msk.bf16.mxu0 %vm3313_vm6, %v3312_v20 }
 0x942   : > { %3021 = vmatprep.subr.bf16.mxu0 %v3312_v20 }
 0x943   : > { %v3007_v32 = vpop.f32.mrf.mxu1 }
 0x945   : > { %v3780_v35 = vpop.f32.mrf.mxu1 }
 0x947   : > { %v3008_v28 = vpop.f32.mrf.mxu1 }
 0x948   : > { %3012 = vmatmul.mubr.msk.bf16.vlgmr.msra.gmra.mxu0 %vm1546_vm8, %v1910_v27 }
 0x949   : > { %3023 = vmatprep.mubr.msk.bf16.mxu0 %vm3313_vm6, %v3312_v20  ;;  %3022 = vmatpush3.bf16.msra.mxu0 %v2040_v12 }
 0x94a   : > { %3033 = vmatprep.subr.bf16.mxu0 %v3312_v20 }
 0xa00   : > { %v3785_v29 = vpop.f32.mrf.mxu0 }
 0xa02   : > { %v3001_v30 = vpop.f32.mrf.mxu0 }
 0xa04   : > { %v3787_v31 = vpop.f32.mrf.mxu0 }
 0xa06   : > { %v3002_v33 = vpop.f32.mrf.mxu0 }
 0xa08   : > { %v1958_v34 = vpop.f32.mrf.mxu0 }
 0xa09   : > { %v1959_v36 = vadd.f32 %v3715_v47, %v1958_v34 }
 0xa0a   : > { %v3013_v37 = vpop.f32.mrf.mxu0 }
 0xa0b   : > { %v1965_v38 = vsel %vm1595_vm9, %v1959_v36, -inf }
 0xa0c   : > { %1966 = vmax.xlane.f32.xlu1 %v1965_v38  ;;  %v1961_v39 = vpop.f32.mrf.mxu0 }
 0xa0d   : > { %v1962_v40 = vadd.f32 %v3715_v47, %v1961_v39 }
 0xa0e   : > { %v3014_v41 = vpop.f32.mrf.mxu0 }
 0xa0f   : > { %v1968_v42 = vsel %vm1595_vm9, %v1962_v40, -inf }
 0xa10   : > { %1969 = vmax.xlane.f32.xlu0 %v1968_v42  ;;  %v1896_v42 = vadd.f32 %v3775_v25, %v3785_v29 }
 0xa26   : > { %1372 = vperm.xlu0 %3157, %v1318_v44  }
 0xa95   : > { %v1967_v46 = vpop.xlane.xlu1 %1966 }
 0xa96   : > { %v1971_v48 = vsub.f32 %v1959_v36, %v1967_v46 }
 0xa98   : > { %v1973_v49 = vmul.f32 1.442695, %v1971_v48 }
 0xa99   : > { %v1970_v50 = vpop.xlane.xlu0 %1969 }
 0xa9a   : > { %3187 = vpow2.f32 %v1973_v49  ;;  %v1972_v51 = vsub.f32 %v1962_v40, %v1970_v50  ;;  %v1529_v49 = vld [vmem:[%s4049_s5 + $0xc] sm:$0xf]  ;;  %v1899_v50 = vadd.f32 %v3780_v35, %v3787_v31 }
 0xa9c   : > { %v1975_v52 = vmul.f32 1.442695, %v1972_v51  ;;  %v2230_v51 = vsel %vm1550_vm7, %v1529_v49, 0  ;;  %v3170_v49 = vld [vmem:[%s3582_s12] sm:$0xff]  }
 0xa9e   : > { %3189 = vpow2.f32 %v1975_v52 }
 0xaa1   : > { %v1373_v61 = vpop.permute.xlu0 %1372 }
 0xaa2   : > { %v1507_v63 = vadd.f32 %v3706_v43, %v1373_v61  ;;  %v2110_v43 = vsel %vm1550_vm7, %v2105_v5, 0 }
 0xaa7   : > { %v3188_v53 = vpop.eup %3187 }
 0xaa8   : > { %v1977_v54 = vsel %vm1595_vm9, %v3188_v53, 0.0 }
 0xaa9   : > { %1978 = vadd.xlane.f32.xlu1 %v1977_v54 }
 0xaab   : > { %v3190_v55 = vpop.eup %3189 }
 0xaac   : > { %v1980_v56 = vsel %vm1595_vm9, %v3190_v55, 0.0 }
 0xaad   : > { %1981 = vadd.xlane.f32.xlu1 %v1980_v56 }
 0xabe   : > { %1377 = vperm.xlu1 %3158, %v1319_v57  }
 0xae1   : > { %2088 = vxpose.xlu1.c.b16.start.end [1/1] (short) (narrow) %v2086_v58, 16 }
 0xb32   : > { %v1979_v59 = vpop.xlane.xlu1 %1978 }
 0xb33   : > { %3191 = vrcp.f32 %v1979_v59 }
 0xb36   : > { %v1982_v60 = vpop.xlane.xlu1 %1981 }
 0xb37   : > { %3193 = vrcp.f32 %v1982_v60 }
 0xb3a   : > { %v1378_v62 = vpop.permute.xlu1 %1377 }
 0xb3b   : > { %v1510_v0 = vadd.f32 %v3708_v45, %v1378_v62 }
 0xb3d   : > { %v1518_v1 = vpack.c.bf16 %v1510_v0, %v1507_v63  ;;  %v2855_v0 = vld [vmem:[%s4050_s10] ss:$0 sm:$0xff]  ;;  %s4055_s10 = sld [smem:[#allocation8_spill]] }
 0xb3f   : > { %v1992_v2 = vsel %vm1595_vm9, %v1518_v1, 0  ;;  %v2177_v26 = vrot.slane %v1518_v1, 4 }
 0xb40   : > { %3016 = vmatpush3.bf16.xpose.msra.mxu1 %v1992_v2  ;;  %v3192_v3 = vpop.eup %3191 }
 0xb41   : > { %3027 = vmatprep.subr.bf16.mxu1 %v3312_v20  ;;  %v1985_v6 = vmul.f32 %v3192_v3, %v3188_v53  ;;  %v2182_v17 = vsel %vm1595_vm9, %v2177_v26, 0 }
 0xb43   : > { %v2096_v45 = vpop.trf.xlu1  ;;  %p2870_p1 = scmp.ne.s32.totalorder %s4055_s10, 1 }
 0xb44   : > { %v3194_v4 = vpop.eup %3193 }
 0xb45   : > { %v1986_v9 = vmul.f32 %v3194_v4, %v3190_v55 }
 0xb47   : > { %v1987_v10 = vpack.c.bf16 %v1986_v9, %v1985_v6 }
 0xb49   : > { %3018 = vmatmul.mubr.msk.bf16.vlgmr.msra.gmra.mxu1 %vm1595_vm9, %v1987_v10 }
 0xb4a   : > { %3028 = vmatpush3.bf16.msra.mxu1 %v2110_v43  ;;  %3029 = vmatprep.mubr.msk.bf16.mxu1 %vm3313_vm6, %v3312_v20 }
 0xb4b   : > { %3039 = vmatprep.subr.bf16.mxu1 %v3312_v20 }
 0xb51   : > { %3030 = vmatmul.mubr.msk.bf16.vlgmr.msra.gmra.mxu1 %vm1546_vm8, %v2096_v45 }
 0xb52   : > { %3041 = vmatprep.mubr.msk.bf16.mxu1 %vm3313_vm6, %v3312_v20  ;;  %3040 = vmatpush3.bf16.msra.mxu1 %v2230_v51 }
 0xb53   : > { %3053 = vmatprep.subr.bf16.mxu1 %v3312_v20 }
 0xc09   : > { %v2028_v13 = vpop.f32.mrf.mxu1 }
 0xc0b   : > { %v3019_v24 = vpop.f32.mrf.mxu1 }
 0xc0d   : > { %v2031_v14 = vpop.f32.mrf.mxu1 }
 0xc0e   : > { %v2035_v15 = vpack.c.bf16 %v2031_v14, %v2028_v13 }
 0xc0f   : > { %v3020_v16 = vpop.f32.mrf.mxu1 }
 0xc10   : > { %3024 = vmatmul.mubr.msk.bf16.vlgmr.msra.gmra.mxu0 %vm1546_vm8, %v2035_v15 }
 0xc11   : > { %3034 = vmatpush3.bf16.xpose.msra.mxu0 %v2182_v17  ;;  %v2146_v18 = vpop.f32.mrf.mxu1  ;;  %3035 = vmatprep.mubr.msk.bf16.mxu0 %vm3313_vm6, %v3312_v20 }
 0xc12   : > { %v2147_v19 = vadd.f32 %v3715_v47, %v2146_v18  ;;  %3045 = vmatprep.subr.bf16.mxu0 %v3312_v20 }
 0xc13   : > { %v3031_v21 = vpop.f32.mrf.mxu1 }
 0xc14   : > { %v2153_v22 = vsel %vm1595_vm9, %v2147_v19, -inf }
 0xc15   : > { %2154 = vmax.xlane.f32.xlu0 %v2153_v22  ;;  %v2149_v23 = vpop.f32.mrf.mxu1 }
 0xc16   : > { %v2150_v32 = vadd.f32 %v3715_v47, %v2149_v23 }
 0xc17   : > { %v3032_v27 = vpop.f32.mrf.mxu1 }
 0xc18   : > { %v2156_v28 = vsel %vm1595_vm9, %v2150_v32, -inf }
 0xc19   : > { %2157 = vmax.xlane.f32.xlu0 %v2156_v28 }
 0xc9e   : > { %v2155_v30 = vpop.xlane.xlu0 %2154 }
 0xc9f   : > { %v2159_v33 = vsub.f32 %v2147_v19, %v2155_v30  ;;  %v3166_v19 = vld [vmem:[%s3572_s8] sm:$0xff]  }
 0xca1   : > { %v2161_v34 = vmul.f32 1.442695, %v2159_v33 }
 0xca2   : > { %v2158_v36 = vpop.xlane.xlu0 %2157 }
 0xca3   : > { %3195 = vpow2.f32 %v2161_v34  ;;  %v2160_v37 = vsub.f32 %v2150_v32, %v2158_v36 }
 0xca5   : > { %v2163_v38 = vmul.f32 1.442695, %v2160_v37 }
 0xca7   : > { %3197 = vpow2.f32 %v2163_v38 }
 0xcb0   : > { %v3196_v39 = vpop.eup %3195 }
 0xcb1   : > { %v2165_v40 = vsel %vm1595_vm9, %v3196_v39, 0.0 }
 0xcb2   : > { %2166 = vadd.xlane.f32.xlu1 %v2165_v40 }
 0xcb4   : > { %v3198_v41 = vpop.eup %3197 }
 0xcb5   : > { %v2168_v47 = vsel %vm1595_vm9, %v3198_v41, 0.0 }
 0xcb6   : > { %2169 = vadd.xlane.f32.xlu0 %v2168_v47 }
 0xcd0   : > { %v2076_v44 = vpop.f32.mrf.mxu0 }
 0xcd1   : > { %v2083_v46 = vadd.f32 %v2076_v44, %v1896_v42  ;;  %v3167_v44 = vld [vmem:[%s3582_s12 + $0x18] sm:$0xff]  }
 0xcd2   : > { %v3025_v48 = vpop.f32.mrf.mxu0 }
 0xcd3   : > { %v3169_v48 = vld [vmem:[%s3582_s12 + $0x8] sm:$0xff]  }
 0xcd4   : > { %v2079_v52 = vpop.f32.mrf.mxu0 }
 0xcd5   : > { %v2084_v53 = vadd.f32 %v2079_v52, %v1899_v50  ;;  %v2858_v50 = vld [vmem:[%s4053_s7] ss:$0 sm:$0xff] }
 0xcd6   : > { %v3026_v54 = vpop.f32.mrf.mxu0 }
 0xd3b   : > { %v2167_v55 = vpop.xlane.xlu1 %2166 }
 0xd3c   : > { %3199 = vrcp.f32 %v2167_v55 }
 0xd3f   : > { %v2170_v56 = vpop.xlane.xlu0 %2169 }
 0xd40   : > { %3201 = vrcp.f32 %v2170_v56 }
 0xd49   : > { %v3200_v25 = vpop.eup %3199 }
 0xd4a   : > { %v2173_v57 = vmul.f32 %v3200_v25, %v3196_v39  ;;  %v2857_v39 = vld [vmem:[%s4052_s28] ss:$0 sm:$0xff] }
 0xd4d   : > { %v3202_v29 = vpop.eup %3201 }
 0xd4e   : > { %v2174_v58 = vmul.f32 %v3202_v29, %v3198_v41 }
 0xd50   : > { %v2175_v59 = vpack.c.bf16 %v2174_v58, %v2173_v57 }
 0xd52   : > { %3036 = vmatmul.mubr.msk.bf16.vlgmr.msra.gmra.mxu0 %vm1595_vm9, %v2175_v59 }
 0xd53   : > { %3049 = vmatprep.mubr.msk.bf16.mxu0 %vm3313_vm6, %v3312_v20 }
 0xe12   : > { %v2218_v35 = vpop.f32.mrf.mxu0 }
 0xe14   : > { %v3037_v31 = vpop.f32.mrf.mxu0 }
 0xe16   : > { %v2221_v60 = vpop.f32.mrf.mxu0 }
 0xe17   : > { %v2225_v61 = vpack.c.bf16 %v2221_v60, %v2218_v35 }
 0xe18   : > { %v3038_v62 = vpop.f32.mrf.mxu0 }
 0xe19   : > { %3042 = vmatmul.mubr.msk.bf16.vlgmr.msra.gmra.mxu1 %vm1546_vm8, %v2225_v61 }
 0xe1a   : > { %3061 = vmatprep.mubr.msk.bf16.mxu1 %vm3313_vm6, %v3312_v20  ;;  %3054 = vmatpush3.bf16.msra.mxu1 %v3167_v44 }
 0xe1b   : > { %3055 = vmatprep.subr.bf16.mxu1 %v3312_v20 }
 0xed9   : > { %v2266_v63 = vpop.f32.mrf.mxu1 }
 0xeda   : > { %v2273_v1 = vadd.f32 %v2266_v63, %v2083_v46  ;;  %v3168_v46 = vld [vmem:[%s3582_s12 + $0x10] sm:$0xff]  }
 0xedb   : > { %v3043_v2 = vpop.f32.mrf.mxu1  ;;  %3056 = vmatpush3.bf16.msra.mxu1 %v3168_v46 }
 0xedc   : > { %v2282_v3 = vadd.f32 %v2855_v0, %v2273_v1  ;;  %3057 = vmatprep.subr.bf16.mxu1 %v3312_v20 }
 0xedd   : > { %v2269_v4 = vpop.f32.mrf.mxu1 }
 0xede   : > { %v2274_v5 = vadd.f32 %v2269_v4, %v2084_v53  ;;  %v2284_v6 = vadd.f32 %v2282_v3, %v3660_v7 }
 0xedf   : > { %v3044_v9 = vpop.f32.mrf.mxu1  ;;  %3058 = vmatpush3.bf16.msra.mxu1 %v3169_v48 }
 0xee0   : > { %v2283_v10 = vadd.f32 %v2855_v0, %v2274_v5  ;;  %v2288_v43 = vsel %vm1410_vm5, %v2284_v6, 0.0  ;;  %3059 = vmatprep.subr.bf16.mxu1 %v3312_v20  ;;  %v2862_v9 = vld [vmem:[%s986_s14] ss:$0 sm:$0xff] }
 0xee1   : > { %2289 = vadd.xlane.f32.xlu0 %v2288_v43 }
 0xee2   : > { %v2285_v45 = vadd.f32 %v2283_v10, %v3662_v8  ;;  %v3165_v8 = vld [vmem:[%s3572_s8 + $0x8] sm:$0xff]   ;;  %s4051_s8 = scalar_lea.vmem %s3961_s16, %s3516_s4 }
 0xee3   : > { %3046 = vmatpush3.bf16.msra.mxu0 %v3165_v8  ;;  %v2856_v34 = vld [vmem:[%s4051_s8] ss:$0 sm:$0xff]  ;;  %3060 = vmatpush3.bf16.msra.mxu1 %v3170_v49 }
 0xee4   : > { %v2291_v11 = vsel %vm1410_vm5, %v2285_v45, 0.0  ;;  %3047 = vmatprep.subr.bf16.mxu0 %v3312_v20 }
 0xee5   : > { %2292 = vadd.xlane.f32.xlu0 %v2291_v11 }
 0xee7   : > { %3048 = vmatpush3.bf16.msra.mxu0 %v3166_v19 }
 0xf6a   : > { %v2290_v12 = vpop.xlane.xlu0 %2289 }
 0xf6b   : > { %v2295_v13 = vmul.f32 0.03125, %v2290_v12 }
 0xf6d   : > { %v2297_v24 = vsub.f32 %v2284_v6, %v2295_v13 }
 0xf6e   : > { %v2293_v26 = vpop.xlane.xlu0 %2292 }
 0xf6f   : > { %v2296_v14 = vmul.f32 0.03125, %v2293_v26  ;;  %v2299_v15 = vmul.f32 %v2297_v24, %v2297_v24 }
 0xf71   : > { %v2298_v16 = vsub.f32 %v2285_v45, %v2296_v14  ;;  %v2301_v7 = vsel %vm1410_vm5, %v2299_v15, 0.0 }
 0xf72   : > { %2302 = vadd.xlane.f32.xlu1 %v2301_v7 }
 0xf73   : > { %v2300_v17 = vmul.f32 %v2298_v16, %v2298_v16 }
 0xf75   : > { %v2304_v18 = vsel %vm1410_vm5, %v2300_v17, 0.0 }
 0xf76   : > { %2305 = vadd.xlane.f32.xlu0 %v2304_v18 }
 0xffb   : > { %v2303_v21 = vpop.xlane.xlu1 %2302 }
 0xffc   : > { %v2307_v22 = vmul.f32 0.03125, %v2303_v21 }
 0xffe   : > { %v2309_v23 = vadd.f32 1e-12, %v2307_v22 }
 0xfff   : > { %v2306_v32 = vpop.xlane.xlu0 %2305 }
0x1000   : > { %3203 = vrsqrt.f32 %v2309_v23  ;;  %v2308_v27 = vmul.f32 0.03125, %v2306_v32 }
0x1002   : > { %v2310_v28 = vadd.f32 1e-12, %v2308_v27 }
0x1004   : > { %3205 = vrsqrt.f32 %v2310_v28 }
0x100d   : > { %v3204_v30 = vpop.eup %3203 }
0x100e   : > { %v2313_v33 = vmul.f32 %v3204_v30, %v2297_v24 }
0x1010   : > { %v2321_v38 = vmul.f32 %v2856_v34, %v2313_v33 }
0x1011   : > { %v3206_v36 = vpop.eup %3205 }
0x1012   : > { %v2314_v37 = vmul.f32 %v3206_v36, %v2298_v16  ;;  %v2329_v41 = vadd.f32 %v2857_v39, %v2321_v38  ;;  %v2868_v38 = vld [vmem:[%s989_s6] ss:$0 sm:$0xff] }
0x1014   : > { %v2322_v40 = vmul.f32 %v2856_v34, %v2314_v37 }
0x1016   : > { %v2330_v47 = vadd.f32 %v2857_v39, %v2322_v40  ;;  %v2869_v40 = vld [vmem:[%s992_s13] ss:$0 sm:$0xff] }
0x1018   : > { %v2331_v42 = vpack.c.bf16 %v2330_v47, %v2329_v41 }
0x101a   : > { %3050 = vmatmul.mubr.msk.bf16.vlgmr.msra.gmra.mxu0 %vm1410_vm5, %v2331_v42 }
0x10da   : > { %v2392_v51 = vpop.f32.mrf.mxu0 }
0x10db   : > { %v2393_v52 = vadd.f32 %v2858_v50, %v2392_v51 }
0x10dc   : > { %v3051_v53 = vpop.f32.mrf.mxu0 }
0x10dd   : > { %v2399_v54 = vmul.f32 %v2393_v52, %v2393_v52 }
0x10de   : > { %v2395_v55 = vpop.f32.mrf.mxu0 }
0x10df   : > { %v2401_v56 = vmul.f32 %v2399_v54, %v2393_v52  ;;  %v2396_v25 = vadd.f32 %v2858_v50, %v2395_v55 }
0x10e0   : > { %v3052_v29 = vpop.f32.mrf.mxu0 }
0x10e1   : > { %v2403_v57 = vmul.f32 0.044715, %v2401_v56  ;;  %v2400_v58 = vmul.f32 %v2396_v25, %v2396_v25 }
0x10e3   : > { %v2405_v59 = vadd.f32 %v2403_v57, %v2393_v52  ;;  %v2402_v35 = vmul.f32 %v2400_v58, %v2396_v25 }
0x10e5   : > { %v2407_v20 = vmul.f32 0.7978846, %v2405_v59  ;;  %v2404_v31 = vmul.f32 0.044715, %v2402_v35 }
0x10e7   : > { %3207 = vtanh.f32 %v2407_v20  ;;  %v2406_v60 = vadd.f32 %v2404_v31, %v2396_v25 }
0x10e9   : > { %v2408_v61 = vmul.f32 0.7978846, %v2406_v60 }
0x10eb   : > { %3209 = vtanh.f32 %v2408_v61 }
0x10f4   : > { %v3208_v62 = vpop.eup %3207 }
0x10f5   : > { %v2411_v63 = vadd.f32 1.0, %v3208_v62 }
0x10f7   : > { %v2413_v1 = vmul.f32 0.5, %v2411_v63 }
0x10f8   : > { %v3210_v0 = vpop.eup %3209 }
0x10f9   : > { %v2412_v2 = vadd.f32 1.0, %v3210_v0  ;;  %v2415_v4 = vmul.f32 %v2413_v1, %v2393_v52 }
0x10fb   : > { %v2414_v3 = vmul.f32 0.5, %v2412_v2 }
0x10fd   : > { %v2416_v5 = vmul.f32 %v2414_v3, %v2396_v25 }
0x10ff   : > { %v2417_v6 = vpack.c.bf16 %v2416_v5, %v2415_v4 }
0x1101   : > { %3062 = vmatmul.mubr.msk.bf16.vlgmr.msra.gmra.mxu1 %vm2457_vm10, %v2417_v6 }
0x11c1   : > { %v2495_v10 = vpop.f32.mrf.mxu1 }
0x11c2   : > { %v2496_v43 = vadd.f32 %v2862_v9, %v2495_v10 }
0x11c3   : > { %v3063_v45 = vpop.f32.mrf.mxu1 }
0x11c4   : > { %v2502_v11 = vadd.f32 %v2496_v43, %v2329_v41 }
0x11c5   : > { %v2498_v12 = vpop.f32.mrf.mxu1 }
0x11c6   : > { %v2499_v13 = vadd.f32 %v2862_v9, %v2498_v12  ;;  %v2506_v24 = vsel %vm1410_vm5, %v2502_v11, 0.0 }
0x11c7   : > { %2507 = vadd.xlane.f32.xlu1 %v2506_v24  ;;  %v3064_v26 = vpop.f32.mrf.mxu1 }
0x11c8   : > { %v2503_v14 = vadd.f32 %v2499_v13, %v2330_v47 }
0x11ca   : > { %v2509_v15 = vsel %vm1410_vm5, %v2503_v14, 0.0 }
0x11cb   : > { %2510 = vadd.xlane.f32.xlu0 %v2509_v15 }
0x1250   : > { %v2508_v16 = vpop.xlane.xlu1 %2507 }
0x1251   : > { %v2512_v7 = vmul.f32 0.03125, %v2508_v16 }
0x1253   : > { %v2514_v17 = vsub.f32 %v2502_v11, %v2512_v7 }
0x1254   : > { %v2511_v18 = vpop.xlane.xlu0 %2510 }
0x1255   : > { %v2513_v8 = vmul.f32 0.03125, %v2511_v18  ;;  %v2516_v19 = vmul.f32 %v2514_v17, %v2514_v17 }
0x1257   : > { %v2515_v21 = vsub.f32 %v2503_v14, %v2513_v8  ;;  %v2518_v22 = vsel %vm1410_vm5, %v2516_v19, 0.0 }
0x1258   : > { %2519 = vadd.xlane.f32.xlu1 %v2518_v22 }
0x1259   : > { %v2517_v23 = vmul.f32 %v2515_v21, %v2515_v21 }
0x125b   : > { %v2521_v32 = vsel %vm1410_vm5, %v2517_v23, 0.0 }
0x125c   : > { %2522 = vadd.xlane.f32.xlu0 %v2521_v32 }
0x12e1   : > { %v2520_v27 = vpop.xlane.xlu1 %2519 }
0x12e2   : > { %v2524_v28 = vmul.f32 0.03125, %v2520_v27 }
0x12e4   : > { %v2526_v30 = vadd.f32 1e-12, %v2524_v28 }
0x12e5   : > { %v2523_v33 = vpop.xlane.xlu0 %2522 }
0x12e6   : > { %3211 = vrsqrt.f32 %v2526_v30  ;;  %v2525_v34 = vmul.f32 0.03125, %v2523_v33 }
0x12e8   : > { %v2527_v36 = vadd.f32 1e-12, %v2525_v34 }
0x12ea   : > { %3213 = vrsqrt.f32 %v2527_v36 }
0x12f3   : > { %v3212_v37 = vpop.eup %3211 }
0x12f4   : > { %v2530_v39 = vmul.f32 %v3212_v37, %v2514_v17 }
0x12f6   : > { %v2538_v41 = vmul.f32 %v2868_v38, %v2530_v39 }
0x12f7   : > { %v3214_v47 = vpop.eup %3213 }
0x12f8   : > { %v2546_v42 = vadd.f32 %v2869_v40, %v2538_v41  ;;  %v2531_v44 = vmul.f32 %v3214_v47, %v2515_v21 }
0x12fa   : > { %2548 = vst.msk [vmem:[#allocation2] sm:$0xff] %vm1410_vm5, %v2546_v42  ;;  %v2539_v46 = vmul.f32 %v2868_v38, %v2531_v44  ;;  %2553 = sbr.rel (%p2870_p1) target bundleno = 4868 (0x1304), region = 124 }
0x12fc   : > { %v2547_v48 = vadd.f32 %v2869_v40, %v2539_v46 }
0x12fe   : > { %2549 = vst.msk [vmem:[#allocation2 + $0x8] sm:$0xff] %vm1410_vm5, %v2547_v48 }
0x12ff   : > { %v2555_v49 = vrot.slane %v2546_v42, 5  ;;  %vm2558_vm11 = vcmask 253952  }
0x1301   : > { %v2557_v50 = vmul.f32 %v2555_v49, %v2546_v42 }
0x1303   : > { %2559 = vst.msk [vmem:[%s3598_s9] sm:$0x1] %vm2558_vm11, %v2557_v50 }
0x1304 PF: > { %s4056_s13 = sld [smem:[#allocation9_spill]]  ;;  %s2573_s3 = sshll.u32 %s3598_s9, 4  ;;  %s2574_s3 = int_to_ptr.vmem [resolvable:$true] %s2573_s3 }
0x1305   : > { %s4058_s8 = sld [smem:[#allocation39_spill]]  ;;  %s4059_s28 = sand.u32 1, %s3283_s26  }
0x1306   : > { %s2561_s11 = scalar_lea.sflag [#allocation4], %s4059_s28  ;;  %s3215_s24 = scalar_lea.vmem %s2574_s3, 16 }
0x1307   : > { %p3216_p2 = scmp.ne.s32.totalorder %s2574_s3, %s3215_s24  ;;  %s3314_s7 = smov [#allocation3]  }
0x1308   : > { %s3219_s12 = sshll.u32 %s3314_s7, 4  ;;  %s3220_s12 = int_to_ptr.vmem [resolvable:$false] %s3219_s12 }
0x1309   : > { %p3217_p4 = pnand %p3216_p2, %p3489_p3  ;;  %s3221_s0 = scalar_lea.vmem %s3220_s12, 32 }
0x130a   : > { %s2871_s6 = sshll.u32 %s4056_s13, 4  ;;  %p3222_p6 = scmp.lt.s32.totalorder %s2574_s3, %s3220_s12 }
0x130b   : > { %s2571_s30 = scalar_lea.hbm %s4058_s8, %s2871_s6  ;;  %p3218_p5 = pneg %p3217_p4 }
0x130c   : > { %p3223_p7 = scmp.lt.s32.totalorder %s3221_s0, %s3215_s24 }
0x130e   : > { %p3224_p8 = por %p3223_p7, %p3222_p6 }
0x1310   : > { %p3225_p10 = pnand %p3224_p8, %p3218_p5 }
0x1312   : > { %3228 = shalt.err (!%p3225_p10)
}
0x1313   : > { %s3229_s14 = scalar_lea.hbm %s2571_s30, 16  ;;  %s3233_s5 = scalar_lea.hbm %s4058_s8, 32 }
0x1314   : > { %p3230_p11 = scmp.ne.s32.totalorder %s2571_s30, %s3229_s14  ;;  %p3234_p0 = scmp.lt.s32.totalorder %s2571_s30, %s4058_s8 }
0x1315   : > { %p3235_p1 = scmp.lt.s32.totalorder %s3233_s5, %s3229_s14 }
0x1316   : > { %p3231_p12 = pnand %p3230_p11, %p3489_p3 }
0x1317   : > { %p3236_p2 = por %p3235_p1, %p3234_p0 }
0x1318   : > { %p3232_p13 = pneg %p3231_p12 }
0x131a   : > { %p3237_p4 = pnand %p3236_p2, %p3232_p13 }
0x131c   : > { %3240 = shalt.err (!%p3237_p4)
}
0x131d   : > { %3068 = dma.vmem_to_hbm [thread:$0]  (%p3489_p3), %s2574_s3, 16, %s2571_s30, %s2561_s11  }
0x131e PF: > { %s4060_s10 = sld [smem:[#allocation12_spill]] }
0x131f   : > { %s4061_s13 = sld [smem:[#allocation6_spill]] }
0x1324   : > { %p3074_p5 = scmp.ge.s32.totalorder %s4060_s10, 2 }
0x1325   : > { %s2585_s27 = sand.u32 1, %s4061_s13  }
0x1326   : > { %p3071_p6 = pnand %p3074_p5, %p3499_p9  ;;  %s2586_s29 = scalar_lea.sflag [#allocation4], %s2585_s27 }
0x1328   : > { %p3072_p7 = pneg %p3071_p6 }
0x132a   : > { %3274 = dma.done.wait (%p3072_p7), %s2586_s29, 16  }
0x132b   : > { %3276 = vsyncadd (%p3072_p7), %s2586_s29, 4294967280  ;;  %s37_s0 = sadd.s32 1, %s4060_s10   ;;  %s4063_s28 = sld [smem:[#allocation7_spill]] }
0x132c   : > { %p34_p8 = scmp.ge.s32.totalorder %s37_s0, 6   ;;  %s4064_s27 = sld [smem:[#allocation17_spill]] }
0x132d   : > { %s4065_s4 = sld [smem:[#allocation10_spill]]  ;;  %s4069_s5 = smov %s3283_s26 }
0x132e   : > { %s4066_s6 = sld [smem:[#allocation11_spill]] }
0x132f   : > { %s4067_s2 = sld [smem:[#allocation13_spill]]  ;;  %36 = sbr.rel (!%p34_p8) target bundleno = 24 (0x18), region = 204 }
0x1330   : > { %s4068_s29 = sld [smem:[#allocation15_spill]] }
0x1331   : > { %s4070_s26 = smov %s4063_s28 }
0x1333   : > { %s4071_s28 = smov %s4065_s4 }
0x1334   :  { %2590 = vsyncpa [#allocation4], 1 }
0x1335   :  { %2592 = vsyncpa [#allocation4 + $0x1], 1 }

</bundles_post_ra>
